<compile_context>
chip_gen: v7x
topology: tpu7x:2x2x1
jax: 0.10.0
libtpu: 0.0.40
codegen_flags: <defaults>
</compile_context>

<pallas_src>
import functools

import jax
import jax.numpy as jnp
import numpy as np
from jax.experimental import pallas as pl
from jax.experimental.pallas import tpu as pltpu


def _round_up(x, m):
    return ((x + m - 1) // m) * m


def _sigmoid(x):
    # tanh-based sigmoid: a single EUP op instead of exp + reciprocal/divide.
    return 0.5 * jnp.tanh(0.5 * x) + 0.5


def _lstm_kernel(tok_ref, emb_ref, wih_ref, whh_ref, b_ref, wout_ref, bout_ref,
                 out_ref, *, T, BP, HP):
    """Single-invocation: embedding gather + LSTM recurrence + final Linear.

    tok_ref:  (T*BP, 1)   int32 token ids, batch padded to BP (sublane mult.)
    emb_ref:  (VP, E)     embedding table, vocab padded (zero rows)
    wih_ref:  (E, 4*HP)   W_ih^T, gate blocks padded to HP lanes each
    whh_ref:  (HP, 4*HP)  W_hh^T, rows + gate blocks padded (zeros)
    b_ref:    (1, 4*HP)   b_ih + b_hh, gate blocks padded
    wout_ref: (HP, OP)    W_out^T, zero-padded
    bout_ref: (1, OP)     b_out, zero-padded
    out_ref:  (BP, OP)

    PyTorch LSTM gate order: i, f, g, o.
    """
    VP = emb_ref.shape[0]

    # --- Embedding gather as a one-hot matmul (fully vectorized, MXU). ---
    tok = tok_ref[...]                                          # (T*BP, 1)
    onehot = (jax.lax.broadcasted_iota(jnp.int32, (T * BP, VP), 1)
              == tok).astype(jnp.float32)                       # (T*BP, VP)
    x = jnp.dot(onehot, emb_ref[...],
                preferred_element_type=jnp.float32)             # (T*BP, E)

    # --- Hoisted input projection: one batched MXU pass, no serial dep. ---
    xproj = (jnp.dot(x, wih_ref[...],
                     preferred_element_type=jnp.float32)
             + b_ref[...])                                      # (T*BP, 4*HP)

    whh = whh_ref[...]                                          # loaded once

    h = jnp.zeros((BP, HP), jnp.float32)
    c = jnp.zeros((BP, HP), jnp.float32)

    # T is small and static: unroll in Python.  All slices are static,
    # sublane-aligned (BP multiple of 8) and lane-aligned (HP = 128), so the
    # serial loop contains no relayout work.
    for t in range(T):
        gates = xproj[t * BP:(t + 1) * BP, :] + jnp.dot(
            h, whh, preferred_element_type=jnp.float32)         # (BP, 4*HP)
        i_g = _sigmoid(gates[:, 0 * HP:1 * HP])
        f_g = _sigmoid(gates[:, 1 * HP:2 * HP])
        g_g = jnp.tanh(gates[:, 2 * HP:3 * HP])
        o_g = _sigmoid(gates[:, 3 * HP:4 * HP])
        c = f_g * c + i_g * g_g
        h = o_g * jnp.tanh(c)

    # Final Linear on the last hidden state; output padded to 128 lanes so
    # this is a lane-dense (unmasked) store.
    out_ref[...] = (jnp.dot(h, wout_ref[...],
                            preferred_element_type=jnp.float32)
                    + bout_ref[...]).astype(out_ref.dtype)


def make_forward(params):
    """One-time parameter preprocessing + jitted per-call forward.

    Returns fwd(tokens: (T, B) int32) -> (B, output_dim) f32.
    """
    emb, w_ih, w_hh, b_ih, b_hh, w_out, b_out = (
        params["emb"], params["w_ih"], params["w_hh"],
        params["b_ih"], params["b_hh"], params["w_out"], params["b_out"])

    VOCAB, E = emb.shape
    H = w_hh.shape[1]            # w_hh: (4H, H) torch layout
    O = w_out.shape[0]           # w_out: (O, H)

    HP = _round_up(max(H, 1), 128)    # per-gate lane width (vreg-aligned)
    OP = _round_up(max(O, 1), 128)    # output lane width (lane-dense store)
    VP = _round_up(max(VOCAB, 1), 8)  # vocab padded to sublane multiple

    def pad_gate_cols(w):  # (X, 4H) -> (X, 4*HP), gate g at cols [g*HP, g*HP+H)
        X = w.shape[0]
        return jnp.pad(w.reshape(X, 4, H),
                       ((0, 0), (0, 0), (0, HP - H))).reshape(X, 4 * HP)

    # One-time weight prep (hoisted out of the per-call path).
    # NOTE: for large H/E on v6e/v7x, cast these to bfloat16 here (keep f32
    # accumulation via preferred_element_type).  Keep h/c/gate elementwise
    # math f32 regardless (v5e VPU/EUP have no native bf16 path).
    emb_p  = jnp.pad(emb.astype(jnp.float32), ((0, VP - VOCAB), (0, 0)))
    wih_t  = pad_gate_cols(jnp.transpose(w_ih).astype(jnp.float32))       # (E, 4HP)
    whh_t  = jnp.pad(pad_gate_cols(jnp.transpose(w_hh).astype(jnp.float32)),
                     ((0, HP - H), (0, 0)))                               # (HP, 4HP)
    b_comb = pad_gate_cols((b_ih + b_hh).astype(jnp.float32)
                           .reshape(1, 4 * H))                            # (1, 4HP)
    wout_t = jnp.pad(jnp.transpose(w_out).astype(jnp.float32),
                     ((0, HP - H), (0, OP - O)))                          # (HP, OP)
    bout   = jnp.pad(b_out.astype(jnp.float32).reshape(1, O),
                     ((0, 0), (0, OP - O)))                               # (1, OP)

    def fwd(tokens):
        T, B = tokens.shape
        BP = _round_up(max(B, 1), 8)      # pad batch to a sublane multiple

        tok_p = jnp.pad(tokens.astype(jnp.int32),
                        ((0, 0), (0, BP - B))).reshape(T * BP, 1)

        kernel = functools.partial(_lstm_kernel, T=T, BP=BP, HP=HP)

        # No grid: a single invocation, whole problem resident in VMEM
        # (a few hundred KB at most -- trivially fits v5e/v6e/v7x budgets).
        # TODO(synk): if T/B/H grow, tile xproj over T and/or add a grid over
        # batch with dimension_semantics=("parallel",) for v7x's 2 TCs.
        in_specs = [pl.BlockSpec(memory_space=pltpu.MemorySpace.VMEM)
                    for _ in range(7)]
        out_spec = pl.BlockSpec(memory_space=pltpu.MemorySpace.VMEM)

        out_p = pl.pallas_call(
            kernel,
            out_shape=jax.ShapeDtypeStruct((BP, OP), jnp.float32),
            in_specs=in_specs,
            out_specs=out_spec,
        )(tok_p, emb_p, wih_t, whh_t, b_comb, wout_t, bout)

        return out_p[:B, :O]

    return jax.jit(fwd)


def reference_forward(tokens, params):
    """Pure-JAX reference matching torch.nn.LSTM (i,f,g,o) + Linear."""
    emb, w_ih, w_hh, b_ih, b_hh, w_out, b_out = (
        params["emb"], params["w_ih"], params["w_hh"],
        params["b_ih"], params["b_hh"], params["w_out"], params["b_out"])
    T, B = tokens.shape
    H = w_hh.shape[1]
    x = jnp.take(emb, tokens, axis=0)

    def step(carry, x_t):
        h, c = carry
        gates = x_t @ w_ih.T + h @ w_hh.T + b_ih + b_hh
        i = jax.nn.sigmoid(gates[:, 0 * H:1 * H])
        f = jax.nn.sigmoid(gates[:, 1 * H:2 * H])
        g = jnp.tanh(gates[:, 2 * H:3 * H])
        o = jax.nn.sigmoid(gates[:, 3 * H:4 * H])
        c_new = f * c + i * g
        h_new = o * jnp.tanh(c_new)
        return (h_new, c_new), h_new

    h0 = jnp.zeros((B, H), jnp.float32)
    c0 = jnp.zeros((B, H), jnp.float32)
    (h_last, _), _ = jax.lax.scan(step, (h0, c0), x)
    return h_last @ w_out.T + b_out


if __name__ == "__main__":
    # Small shapes consistent with the module's forward.
    VOCAB, EMB_DIM, HIDDEN, OUT_DIM = 20, 32, 32, 16
    T, B = 8, 2

    key = jax.random.PRNGKey(0)
    k_emb, k_wih, k_whh, k_bih, k_bhh, k_wo, k_bo, k_tok = jax.random.split(key, 8)

    params = {
        "emb":   jax.random.normal(k_emb, (VOCAB, EMB_DIM), jnp.float32) * 0.1,
        "w_ih":  jax.random.normal(k_wih, (4 * HIDDEN, EMB_DIM), jnp.float32) * 0.1,
        "w_hh":  jax.random.normal(k_whh, (4 * HIDDEN, HIDDEN), jnp.float32) * 0.1,
        "b_ih":  jax.random.normal(k_bih, (4 * HIDDEN,), jnp.float32) * 0.1,
        "b_hh":  jax.random.normal(k_bhh, (4 * HIDDEN,), jnp.float32) * 0.1,
        "w_out": jax.random.normal(k_wo, (OUT_DIM, HIDDEN), jnp.float32) * 0.1,
        "b_out": jax.random.normal(k_bo, (OUT_DIM,), jnp.float32) * 0.1,
    }
    tokens = jax.random.randint(k_tok, (T, B), 0, VOCAB, dtype=jnp.int32)

    forward = make_forward(params)          # one-time weight prep + jit
    out = jax.block_until_ready(forward(tokens))

    ref = jax.block_until_ready(reference_forward(tokens, params))
    np.testing.assert_allclose(np.asarray(out), np.asarray(ref),
                               rtol=1e-5, atol=1e-5)

    print("KERNEL_OK")
</pallas_src>

<mosaic_0001>
module attributes {stable_mosaic.version = 11 : i64} {
  func.func @_lstm_kernel(%arg0: memref<64x1xi32, #tpu.memory_space<vmem>>, %arg1: memref<24x32xf32, #tpu.memory_space<vmem>>, %arg2: memref<32x512xf32, #tpu.memory_space<vmem>>, %arg3: memref<128x512xf32, #tpu.memory_space<vmem>>, %arg4: memref<1x512xf32, #tpu.memory_space<vmem>>, %arg5: memref<128x128xf32, #tpu.memory_space<vmem>>, %arg6: memref<1x128xf32, #tpu.memory_space<vmem>>, %arg7: memref<8x128xf32, #tpu.memory_space<vmem>>) attributes {dimension_semantics = [], scalar_prefetch = 0 : i64, scratch_operands = 0 : i64, tpu.core_type = #tpu.core_type<tc>} {
    %c0 = arith.constant 0 : index
    %c0_0 = arith.constant 0 : index
    %0 = vector.load %arg0[%c0, %c0_0] : memref<64x1xi32, #tpu.memory_space<vmem>>, vector<64x1xi32>
    %1 = tpu.iota {dimensions = array<i32: 1>} : vector<64x24xi32>
    %2 = vector.broadcast %0 : vector<64x1xi32> to vector<64x24xi32>
    %3 = arith.cmpi eq, %1, %2 : vector<64x24xi32>
    %4 = arith.extui %3 : vector<64x24xi1> to vector<64x24xi32>
    %5 = arith.sitofp %4 : vector<64x24xi32> to vector<64x24xf32>
    %c0_1 = arith.constant 0 : index
    %c0_2 = arith.constant 0 : index
    %6 = vector.load %arg1[%c0_1, %c0_2] : memref<24x32xf32, #tpu.memory_space<vmem>>, vector<24x32xf32>
    %cst = arith.constant dense<0.000000e+00> : vector<64x32xf32>
    %7 = tpu.matmul %5, %6, %cst {dimension_numbers = #tpu.dot_dimension_numbers<[1], [0], [0], [1], [0, 0, 1, 1], [], []>} : vector<64x24xf32>, vector<24x32xf32>, vector<64x32xf32> -> vector<64x32xf32>
    %c0_3 = arith.constant 0 : index
    %c0_4 = arith.constant 0 : index
    %8 = vector.load %arg2[%c0_3, %c0_4] : memref<32x512xf32, #tpu.memory_space<vmem>>, vector<32x512xf32>
    %cst_5 = arith.constant dense<0.000000e+00> : vector<64x512xf32>
    %9 = tpu.matmul %7, %8, %cst_5 {dimension_numbers = #tpu.dot_dimension_numbers<[1], [0], [0], [1], [0, 0, 1, 1], [], []>} : vector<64x32xf32>, vector<32x512xf32>, vector<64x512xf32> -> vector<64x512xf32>
    %c0_6 = arith.constant 0 : index
    %c0_7 = arith.constant 0 : index
    %10 = vector.load %arg4[%c0_6, %c0_7] : memref<1x512xf32, #tpu.memory_space<vmem>>, vector<1x512xf32>
    %11 = vector.broadcast %10 : vector<1x512xf32> to vector<64x512xf32>
    %12 = arith.addf %9, %11 : vector<64x512xf32>
    %c0_8 = arith.constant 0 : index
    %c0_9 = arith.constant 0 : index
    %13 = vector.load %arg3[%c0_8, %c0_9] : memref<128x512xf32, #tpu.memory_space<vmem>>, vector<128x512xf32>
    %cst_10 = arith.constant 0.000000e+00 : f32
    %14 = vector.broadcast %cst_10 : f32 to vector<8x128xf32>
    %cst_11 = arith.constant 0.000000e+00 : f32
    %15 = vector.broadcast %cst_11 : f32 to vector<8x128xf32>
    %16 = vector.extract_strided_slice %12 {offsets = [0, 0], sizes = [8, 512], strides = [1, 1]} : vector<64x512xf32> to vector<8x512xf32>
    %cst_12 = arith.constant dense<0.000000e+00> : vector<8x512xf32>
    %17 = tpu.matmul %14, %13, %cst_12 {dimension_numbers = #tpu.dot_dimension_numbers<[1], [0], [0], [1], [0, 0, 1, 1], [], []>} : vector<8x128xf32>, vector<128x512xf32>, vector<8x512xf32> -> vector<8x512xf32>
    %18 = arith.addf %16, %17 : vector<8x512xf32>
    %19 = vector.extract_strided_slice %18 {offsets = [0, 0], sizes = [8, 128], strides = [1, 1]} : vector<8x512xf32> to vector<8x128xf32>
    %cst_13 = arith.constant 5.000000e-01 : f32
    %20 = vector.broadcast %cst_13 : f32 to vector<8x128xf32>
    %21 = arith.mulf %20, %19 : vector<8x128xf32>
    %22 = math.tanh %21 : vector<8x128xf32>
    %cst_14 = arith.constant 5.000000e-01 : f32
    %23 = vector.broadcast %cst_14 : f32 to vector<8x128xf32>
    %24 = arith.mulf %23, %22 : vector<8x128xf32>
    %cst_15 = arith.constant 5.000000e-01 : f32
    %25 = vector.broadcast %cst_15 : f32 to vector<8x128xf32>
    %26 = arith.addf %24, %25 : vector<8x128xf32>
    %27 = vector.extract_strided_slice %18 {offsets = [0, 128], sizes = [8, 128], strides = [1, 1]} : vector<8x512xf32> to vector<8x128xf32>
    %cst_16 = arith.constant 5.000000e-01 : f32
    %28 = vector.broadcast %cst_16 : f32 to vector<8x128xf32>
    %29 = arith.mulf %28, %27 : vector<8x128xf32>
    %30 = math.tanh %29 : vector<8x128xf32>
    %cst_17 = arith.constant 5.000000e-01 : f32
    %31 = vector.broadcast %cst_17 : f32 to vector<8x128xf32>
    %32 = arith.mulf %31, %30 : vector<8x128xf32>
    %cst_18 = arith.constant 5.000000e-01 : f32
    %33 = vector.broadcast %cst_18 : f32 to vector<8x128xf32>
    %34 = arith.addf %32, %33 : vector<8x128xf32>
    %35 = vector.extract_strided_slice %18 {offsets = [0, 256], sizes = [8, 128], strides = [1, 1]} : vector<8x512xf32> to vector<8x128xf32>
    %36 = math.tanh %35 : vector<8x128xf32>
    %37 = vector.extract_strided_slice %18 {offsets = [0, 384], sizes = [8, 128], strides = [1, 1]} : vector<8x512xf32> to vector<8x128xf32>
    %cst_19 = arith.constant 5.000000e-01 : f32
    %38 = vector.broadcast %cst_19 : f32 to vector<8x128xf32>
    %39 = arith.mulf %38, %37 : vector<8x128xf32>
    %40 = math.tanh %39 : vector<8x128xf32>
    %cst_20 = arith.constant 5.000000e-01 : f32
    %41 = vector.broadcast %cst_20 : f32 to vector<8x128xf32>
    %42 = arith.mulf %41, %40 : vector<8x128xf32>
    %cst_21 = arith.constant 5.000000e-01 : f32
    %43 = vector.broadcast %cst_21 : f32 to vector<8x128xf32>
    %44 = arith.addf %42, %43 : vector<8x128xf32>
    %45 = arith.mulf %34, %15 : vector<8x128xf32>
    %46 = arith.mulf %26, %36 : vector<8x128xf32>
    %47 = arith.addf %45, %46 : vector<8x128xf32>
    %48 = math.tanh %47 : vector<8x128xf32>
    %49 = arith.mulf %44, %48 : vector<8x128xf32>
    %50 = vector.extract_strided_slice %12 {offsets = [8, 0], sizes = [8, 512], strides = [1, 1]} : vector<64x512xf32> to vector<8x512xf32>
    %cst_22 = arith.constant dense<0.000000e+00> : vector<8x512xf32>
    %51 = tpu.matmul %49, %13, %cst_22 {dimension_numbers = #tpu.dot_dimension_numbers<[1], [0], [0], [1], [0, 0, 1, 1], [], []>} : vector<8x128xf32>, vector<128x512xf32>, vector<8x512xf32> -> vector<8x512xf32>
    %52 = arith.addf %50, %51 : vector<8x512xf32>
    %53 = vector.extract_strided_slice %52 {offsets = [0, 0], sizes = [8, 128], strides = [1, 1]} : vector<8x512xf32> to vector<8x128xf32>
    %cst_23 = arith.constant 5.000000e-01 : f32
    %54 = vector.broadcast %cst_23 : f32 to vector<8x128xf32>
    %55 = arith.mulf %54, %53 : vector<8x128xf32>
    %56 = math.tanh %55 : vector<8x128xf32>
    %cst_24 = arith.constant 5.000000e-01 : f32
    %57 = vector.broadcast %cst_24 : f32 to vector<8x128xf32>
    %58 = arith.mulf %57, %56 : vector<8x128xf32>
    %cst_25 = arith.constant 5.000000e-01 : f32
    %59 = vector.broadcast %cst_25 : f32 to vector<8x128xf32>
    %60 = arith.addf %58, %59 : vector<8x128xf32>
    %61 = vector.extract_strided_slice %52 {offsets = [0, 128], sizes = [8, 128], strides = [1, 1]} : vector<8x512xf32> to vector<8x128xf32>
    %cst_26 = arith.constant 5.000000e-01 : f32
    %62 = vector.broadcast %cst_26 : f32 to vector<8x128xf32>
    %63 = arith.mulf %62, %61 : vector<8x128xf32>
    %64 = math.tanh %63 : vector<8x128xf32>
    %cst_27 = arith.constant 5.000000e-01 : f32
    %65 = vector.broadcast %cst_27 : f32 to vector<8x128xf32>
    %66 = arith.mulf %65, %64 : vector<8x128xf32>
    %cst_28 = arith.constant 5.000000e-01 : f32
    %67 = vector.broadcast %cst_28 : f32 to vector<8x128xf32>
    %68 = arith.addf %66, %67 : vector<8x128xf32>
    %69 = vector.extract_strided_slice %52 {offsets = [0, 256], sizes = [8, 128], strides = [1, 1]} : vector<8x512xf32> to vector<8x128xf32>
    %70 = math.tanh %69 : vector<8x128xf32>
    %71 = vector.extract_strided_slice %52 {offsets = [0, 384], sizes = [8, 128], strides = [1, 1]} : vector<8x512xf32> to vector<8x128xf32>
    %cst_29 = arith.constant 5.000000e-01 : f32
    %72 = vector.broadcast %cst_29 : f32 to vector<8x128xf32>
    %73 = arith.mulf %72, %71 : vector<8x128xf32>
    %74 = math.tanh %73 : vector<8x128xf32>
    %cst_30 = arith.constant 5.000000e-01 : f32
    %75 = vector.broadcast %cst_30 : f32 to vector<8x128xf32>
    %76 = arith.mulf %75, %74 : vector<8x128xf32>
    %cst_31 = arith.constant 5.000000e-01 : f32
    %77 = vector.broadcast %cst_31 : f32 to vector<8x128xf32>
    %78 = arith.addf %76, %77 : vector<8x128xf32>
    %79 = arith.mulf %68, %47 : vector<8x128xf32>
    %80 = arith.mulf %60, %70 : vector<8x128xf32>
    %81 = arith.addf %79, %80 : vector<8x128xf32>
    %82 = math.tanh %81 : vector<8x128xf32>
    %83 = arith.mulf %78, %82 : vector<8x128xf32>
    %84 = vector.extract_strided_slice %12 {offsets = [16, 0], sizes = [8, 512], strides = [1, 1]} : vector<64x512xf32> to vector<8x512xf32>
    %cst_32 = arith.constant dense<0.000000e+00> : vector<8x512xf32>
    %85 = tpu.matmul %83, %13, %cst_32 {dimension_numbers = #tpu.dot_dimension_numbers<[1], [0], [0], [1], [0, 0, 1, 1], [], []>} : vector<8x128xf32>, vector<128x512xf32>, vector<8x512xf32> -> vector<8x512xf32>
    %86 = arith.addf %84, %85 : vector<8x512xf32>
    %87 = vector.extract_strided_slice %86 {offsets = [0, 0], sizes = [8, 128], strides = [1, 1]} : vector<8x512xf32> to vector<8x128xf32>
    %cst_33 = arith.constant 5.000000e-01 : f32
    %88 = vector.broadcast %cst_33 : f32 to vector<8x128xf32>
    %89 = arith.mulf %88, %87 : vector<8x128xf32>
    %90 = math.tanh %89 : vector<8x128xf32>
    %cst_34 = arith.constant 5.000000e-01 : f32
    %91 = vector.broadcast %cst_34 : f32 to vector<8x128xf32>
    %92 = arith.mulf %91, %90 : vector<8x128xf32>
    %cst_35 = arith.constant 5.000000e-01 : f32
    %93 = vector.broadcast %cst_35 : f32 to vector<8x128xf32>
    %94 = arith.addf %92, %93 : vector<8x128xf32>
    %95 = vector.extract_strided_slice %86 {offsets = [0, 128], sizes = [8, 128], strides = [1, 1]} : vector<8x512xf32> to vector<8x128xf32>
    %cst_36 = arith.constant 5.000000e-01 : f32
    %96 = vector.broadcast %cst_36 : f32 to vector<8x128xf32>
    %97 = arith.mulf %96, %95 : vector<8x128xf32>
    %98 = math.tanh %97 : vector<8x128xf32>
    %cst_37 = arith.constant 5.000000e-01 : f32
    %99 = vector.broadcast %cst_37 : f32 to vector<8x128xf32>
    %100 = arith.mulf %99, %98 : vector<8x128xf32>
    %cst_38 = arith.constant 5.000000e-01 : f32
    %101 = vector.broadcast %cst_38 : f32 to vector<8x128xf32>
    %102 = arith.addf %100, %101 : vector<8x128xf32>
    %103 = vector.extract_strided_slice %86 {offsets = [0, 256], sizes = [8, 128], strides = [1, 1]} : vector<8x512xf32> to vector<8x128xf32>
    %104 = math.tanh %103 : vector<8x128xf32>
    %105 = vector.extract_strided_slice %86 {offsets = [0, 384], sizes = [8, 128], strides = [1, 1]} : vector<8x512xf32> to vector<8x128xf32>
    %cst_39 = arith.constant 5.000000e-01 : f32
    %106 = vector.broadcast %cst_39 : f32 to vector<8x128xf32>
    %107 = arith.mulf %106, %105 : vector<8x128xf32>
    %108 = math.tanh %107 : vector<8x128xf32>
    %cst_40 = arith.constant 5.000000e-01 : f32
    %109 = vector.broadcast %cst_40 : f32 to vector<8x128xf32>
    %110 = arith.mulf %109, %108 : vector<8x128xf32>
    %cst_41 = arith.constant 5.000000e-01 : f32
    %111 = vector.broadcast %cst_41 : f32 to vector<8x128xf32>
    %112 = arith.addf %110, %111 : vector<8x128xf32>
    %113 = arith.mulf %102, %81 : vector<8x128xf32>
    %114 = arith.mulf %94, %104 : vector<8x128xf32>
    %115 = arith.addf %113, %114 : vector<8x128xf32>
    %116 = math.tanh %115 : vector<8x128xf32>
    %117 = arith.mulf %112, %116 : vector<8x128xf32>
    %118 = vector.extract_strided_slice %12 {offsets = [24, 0], sizes = [8, 512], strides = [1, 1]} : vector<64x512xf32> to vector<8x512xf32>
    %cst_42 = arith.constant dense<0.000000e+00> : vector<8x512xf32>
    %119 = tpu.matmul %117, %13, %cst_42 {dimension_numbers = #tpu.dot_dimension_numbers<[1], [0], [0], [1], [0, 0, 1, 1], [], []>} : vector<8x128xf32>, vector<128x512xf32>, vector<8x512xf32> -> vector<8x512xf32>
    %120 = arith.addf %118, %119 : vector<8x512xf32>
    %121 = vector.extract_strided_slice %120 {offsets = [0, 0], sizes = [8, 128], strides = [1, 1]} : vector<8x512xf32> to vector<8x128xf32>
    %cst_43 = arith.constant 5.000000e-01 : f32
    %122 = vector.broadcast %cst_43 : f32 to vector<8x128xf32>
    %123 = arith.mulf %122, %121 : vector<8x128xf32>
    %124 = math.tanh %123 : vector<8x128xf32>
    %cst_44 = arith.constant 5.000000e-01 : f32
    %125 = vector.broadcast %cst_44 : f32 to vector<8x128xf32>
    %126 = arith.mulf %125, %124 : vector<8x128xf32>
    %cst_45 = arith.constant 5.000000e-01 : f32
    %127 = vector.broadcast %cst_45 : f32 to vector<8x128xf32>
    %128 = arith.addf %126, %127 : vector<8x128xf32>
    %129 = vector.extract_strided_slice %120 {offsets = [0, 128], sizes = [8, 128], strides = [1, 1]} : vector<8x512xf32> to vector<8x128xf32>
    %cst_46 = arith.constant 5.000000e-01 : f32
    %130 = vector.broadcast %cst_46 : f32 to vector<8x128xf32>
    %131 = arith.mulf %130, %129 : vector<8x128xf32>
    %132 = math.tanh %131 : vector<8x128xf32>
    %cst_47 = arith.constant 5.000000e-01 : f32
    %133 = vector.broadcast %cst_47 : f32 to vector<8x128xf32>
    %134 = arith.mulf %133, %132 : vector<8x128xf32>
    %cst_48 = arith.constant 5.000000e-01 : f32
    %135 = vector.broadcast %cst_48 : f32 to vector<8x128xf32>
    %136 = arith.addf %134, %135 : vector<8x128xf32>
    %137 = vector.extract_strided_slice %120 {offsets = [0, 256], sizes = [8, 128], strides = [1, 1]} : vector<8x512xf32> to vector<8x128xf32>
    %138 = math.tanh %137 : vector<8x128xf32>
    %139 = vector.extract_strided_slice %120 {offsets = [0, 384], sizes = [8, 128], strides = [1, 1]} : vector<8x512xf32> to vector<8x128xf32>
    %cst_49 = arith.constant 5.000000e-01 : f32
    %140 = vector.broadcast %cst_49 : f32 to vector<8x128xf32>
    %141 = arith.mulf %140, %139 : vector<8x128xf32>
    %142 = math.tanh %141 : vector<8x128xf32>
    %cst_50 = arith.constant 5.000000e-01 : f32
    %143 = vector.broadcast %cst_50 : f32 to vector<8x128xf32>
    %144 = arith.mulf %143, %142 : vector<8x128xf32>
    %cst_51 = arith.constant 5.000000e-01 : f32
    %145 = vector.broadcast %cst_51 : f32 to vector<8x128xf32>
    %146 = arith.addf %144, %145 : vector<8x128xf32>
    %147 = arith.mulf %136, %115 : vector<8x128xf32>
    %148 = arith.mulf %128, %138 : vector<8x128xf32>
    %149 = arith.addf %147, %148 : vector<8x128xf32>
    %150 = math.tanh %149 : vector<8x128xf32>
    %151 = arith.mulf %146, %150 : vector<8x128xf32>
    %152 = vector.extract_strided_slice %12 {offsets = [32, 0], sizes = [8, 512], strides = [1, 1]} : vector<64x512xf32> to vector<8x512xf32>
    %cst_52 = arith.constant dense<0.000000e+00> : vector<8x512xf32>
    %153 = tpu.matmul %151, %13, %cst_52 {dimension_numbers = #tpu.dot_dimension_numbers<[1], [0], [0], [1], [0, 0, 1, 1], [], []>} : vector<8x128xf32>, vector<128x512xf32>, vector<8x512xf32> -> vector<8x512xf32>
    %154 = arith.addf %152, %153 : vector<8x512xf32>
    %155 = vector.extract_strided_slice %154 {offsets = [0, 0], sizes = [8, 128], strides = [1, 1]} : vector<8x512xf32> to vector<8x128xf32>
    %cst_53 = arith.constant 5.000000e-01 : f32
    %156 = vector.broadcast %cst_53 : f32 to vector<8x128xf32>
    %157 = arith.mulf %156, %155 : vector<8x128xf32>
    %158 = math.tanh %157 : vector<8x128xf32>
    %cst_54 = arith.constant 5.000000e-01 : f32
    %159 = vector.broadcast %cst_54 : f32 to vector<8x128xf32>
    %160 = arith.mulf %159, %158 : vector<8x128xf32>
    %cst_55 = arith.constant 5.000000e-01 : f32
    %161 = vector.broadcast %cst_55 : f32 to vector<8x128xf32>
    %162 = arith.addf %160, %161 : vector<8x128xf32>
    %163 = vector.extract_strided_slice %154 {offsets = [0, 128], sizes = [8, 128], strides = [1, 1]} : vector<8x512xf32> to vector<8x128xf32>
    %cst_56 = arith.constant 5.000000e-01 : f32
    %164 = vector.broadcast %cst_56 : f32 to vector<8x128xf32>
    %165 = arith.mulf %164, %163 : vector<8x128xf32>
    %166 = math.tanh %165 : vector<8x128xf32>
    %cst_57 = arith.constant 5.000000e-01 : f32
    %167 = vector.broadcast %cst_57 : f32 to vector<8x128xf32>
    %168 = arith.mulf %167, %166 : vector<8x128xf32>
    %cst_58 = arith.constant 5.000000e-01 : f32
    %169 = vector.broadcast %cst_58 : f32 to vector<8x128xf32>
    %170 = arith.addf %168, %169 : vector<8x128xf32>
    %171 = vector.extract_strided_slice %154 {offsets = [0, 256], sizes = [8, 128], strides = [1, 1]} : vector<8x512xf32> to vector<8x128xf32>
    %172 = math.tanh %171 : vector<8x128xf32>
    %173 = vector.extract_strided_slice %154 {offsets = [0, 384], sizes = [8, 128], strides = [1, 1]} : vector<8x512xf32> to vector<8x128xf32>
    %cst_59 = arith.constant 5.000000e-01 : f32
    %174 = vector.broadcast %cst_59 : f32 to vector<8x128xf32>
    %175 = arith.mulf %174, %173 : vector<8x128xf32>
    %176 = math.tanh %175 : vector<8x128xf32>
    %cst_60 = arith.constant 5.000000e-01 : f32
    %177 = vector.broadcast %cst_60 : f32 to vector<8x128xf32>
    %178 = arith.mulf %177, %176 : vector<8x128xf32>
    %cst_61 = arith.constant 5.000000e-01 : f32
    %179 = vector.broadcast %cst_61 : f32 to vector<8x128xf32>
    %180 = arith.addf %178, %179 : vector<8x128xf32>
    %181 = arith.mulf %170, %149 : vector<8x128xf32>
    %182 = arith.mulf %162, %172 : vector<8x128xf32>
    %183 = arith.addf %181, %182 : vector<8x128xf32>
    %184 = math.tanh %183 : vector<8x128xf32>
    %185 = arith.mulf %180, %184 : vector<8x128xf32>
    %186 = vector.extract_strided_slice %12 {offsets = [40, 0], sizes = [8, 512], strides = [1, 1]} : vector<64x512xf32> to vector<8x512xf32>
    %cst_62 = arith.constant dense<0.000000e+00> : vector<8x512xf32>
    %187 = tpu.matmul %185, %13, %cst_62 {dimension_numbers = #tpu.dot_dimension_numbers<[1], [0], [0], [1], [0, 0, 1, 1], [], []>} : vector<8x128xf32>, vector<128x512xf32>, vector<8x512xf32> -> vector<8x512xf32>
    %188 = arith.addf %186, %187 : vector<8x512xf32>
    %189 = vector.extract_strided_slice %188 {offsets = [0, 0], sizes = [8, 128], strides = [1, 1]} : vector<8x512xf32> to vector<8x128xf32>
    %cst_63 = arith.constant 5.000000e-01 : f32
    %190 = vector.broadcast %cst_63 : f32 to vector<8x128xf32>
    %191 = arith.mulf %190, %189 : vector<8x128xf32>
    %192 = math.tanh %191 : vector<8x128xf32>
    %cst_64 = arith.constant 5.000000e-01 : f32
    %193 = vector.broadcast %cst_64 : f32 to vector<8x128xf32>
    %194 = arith.mulf %193, %192 : vector<8x128xf32>
    %cst_65 = arith.constant 5.000000e-01 : f32
    %195 = vector.broadcast %cst_65 : f32 to vector<8x128xf32>
    %196 = arith.addf %194, %195 : vector<8x128xf32>
    %197 = vector.extract_strided_slice %188 {offsets = [0, 128], sizes = [8, 128], strides = [1, 1]} : vector<8x512xf32> to vector<8x128xf32>
    %cst_66 = arith.constant 5.000000e-01 : f32
    %198 = vector.broadcast %cst_66 : f32 to vector<8x128xf32>
    %199 = arith.mulf %198, %197 : vector<8x128xf32>
    %200 = math.tanh %199 : vector<8x128xf32>
    %cst_67 = arith.constant 5.000000e-01 : f32
    %201 = vector.broadcast %cst_67 : f32 to vector<8x128xf32>
    %202 = arith.mulf %201, %200 : vector<8x128xf32>
    %cst_68 = arith.constant 5.000000e-01 : f32
    %203 = vector.broadcast %cst_68 : f32 to vector<8x128xf32>
    %204 = arith.addf %202, %203 : vector<8x128xf32>
    %205 = vector.extract_strided_slice %188 {offsets = [0, 256], sizes = [8, 128], strides = [1, 1]} : vector<8x512xf32> to vector<8x128xf32>
    %206 = math.tanh %205 : vector<8x128xf32>
    %207 = vector.extract_strided_slice %188 {offsets = [0, 384], sizes = [8, 128], strides = [1, 1]} : vector<8x512xf32> to vector<8x128xf32>
    %cst_69 = arith.constant 5.000000e-01 : f32
    %208 = vector.broadcast %cst_69 : f32 to vector<8x128xf32>
    %209 = arith.mulf %208, %207 : vector<8x128xf32>
    %210 = math.tanh %209 : vector<8x128xf32>
    %cst_70 = arith.constant 5.000000e-01 : f32
    %211 = vector.broadcast %cst_70 : f32 to vector<8x128xf32>
    %212 = arith.mulf %211, %210 : vector<8x128xf32>
    %cst_71 = arith.constant 5.000000e-01 : f32
    %213 = vector.broadcast %cst_71 : f32 to vector<8x128xf32>
    %214 = arith.addf %212, %213 : vector<8x128xf32>
    %215 = arith.mulf %204, %183 : vector<8x128xf32>
    %216 = arith.mulf %196, %206 : vector<8x128xf32>
    %217 = arith.addf %215, %216 : vector<8x128xf32>
    %218 = math.tanh %217 : vector<8x128xf32>
    %219 = arith.mulf %214, %218 : vector<8x128xf32>
    %220 = vector.extract_strided_slice %12 {offsets = [48, 0], sizes = [8, 512], strides = [1, 1]} : vector<64x512xf32> to vector<8x512xf32>
    %cst_72 = arith.constant dense<0.000000e+00> : vector<8x512xf32>
    %221 = tpu.matmul %219, %13, %cst_72 {dimension_numbers = #tpu.dot_dimension_numbers<[1], [0], [0], [1], [0, 0, 1, 1], [], []>} : vector<8x128xf32>, vector<128x512xf32>, vector<8x512xf32> -> vector<8x512xf32>
    %222 = arith.addf %220, %221 : vector<8x512xf32>
    %223 = vector.extract_strided_slice %222 {offsets = [0, 0], sizes = [8, 128], strides = [1, 1]} : vector<8x512xf32> to vector<8x128xf32>
    %cst_73 = arith.constant 5.000000e-01 : f32
    %224 = vector.broadcast %cst_73 : f32 to vector<8x128xf32>
    %225 = arith.mulf %224, %223 : vector<8x128xf32>
    %226 = math.tanh %225 : vector<8x128xf32>
    %cst_74 = arith.constant 5.000000e-01 : f32
    %227 = vector.broadcast %cst_74 : f32 to vector<8x128xf32>
    %228 = arith.mulf %227, %226 : vector<8x128xf32>
    %cst_75 = arith.constant 5.000000e-01 : f32
    %229 = vector.broadcast %cst_75 : f32 to vector<8x128xf32>
    %230 = arith.addf %228, %229 : vector<8x128xf32>
    %231 = vector.extract_strided_slice %222 {offsets = [0, 128], sizes = [8, 128], strides = [1, 1]} : vector<8x512xf32> to vector<8x128xf32>
    %cst_76 = arith.constant 5.000000e-01 : f32
    %232 = vector.broadcast %cst_76 : f32 to vector<8x128xf32>
    %233 = arith.mulf %232, %231 : vector<8x128xf32>
    %234 = math.tanh %233 : vector<8x128xf32>
    %cst_77 = arith.constant 5.000000e-01 : f32
    %235 = vector.broadcast %cst_77 : f32 to vector<8x128xf32>
    %236 = arith.mulf %235, %234 : vector<8x128xf32>
    %cst_78 = arith.constant 5.000000e-01 : f32
    %237 = vector.broadcast %cst_78 : f32 to vector<8x128xf32>
    %238 = arith.addf %236, %237 : vector<8x128xf32>
    %239 = vector.extract_strided_slice %222 {offsets = [0, 256], sizes = [8, 128], strides = [1, 1]} : vector<8x512xf32> to vector<8x128xf32>
    %240 = math.tanh %239 : vector<8x128xf32>
    %241 = vector.extract_strided_slice %222 {offsets = [0, 384], sizes = [8, 128], strides = [1, 1]} : vector<8x512xf32> to vector<8x128xf32>
    %cst_79 = arith.constant 5.000000e-01 : f32
    %242 = vector.broadcast %cst_79 : f32 to vector<8x128xf32>
    %243 = arith.mulf %242, %241 : vector<8x128xf32>
    %244 = math.tanh %243 : vector<8x128xf32>
    %cst_80 = arith.constant 5.000000e-01 : f32
    %245 = vector.broadcast %cst_80 : f32 to vector<8x128xf32>
    %246 = arith.mulf %245, %244 : vector<8x128xf32>
    %cst_81 = arith.constant 5.000000e-01 : f32
    %247 = vector.broadcast %cst_81 : f32 to vector<8x128xf32>
    %248 = arith.addf %246, %247 : vector<8x128xf32>
    %249 = arith.mulf %238, %217 : vector<8x128xf32>
    %250 = arith.mulf %230, %240 : vector<8x128xf32>
    %251 = arith.addf %249, %250 : vector<8x128xf32>
    %252 = math.tanh %251 : vector<8x128xf32>
    %253 = arith.mulf %248, %252 : vector<8x128xf32>
    %254 = vector.extract_strided_slice %12 {offsets = [56, 0], sizes = [8, 512], strides = [1, 1]} : vector<64x512xf32> to vector<8x512xf32>
    %cst_82 = arith.constant dense<0.000000e+00> : vector<8x512xf32>
    %255 = tpu.matmul %253, %13, %cst_82 {dimension_numbers = #tpu.dot_dimension_numbers<[1], [0], [0], [1], [0, 0, 1, 1], [], []>} : vector<8x128xf32>, vector<128x512xf32>, vector<8x512xf32> -> vector<8x512xf32>
    %256 = arith.addf %254, %255 : vector<8x512xf32>
    %257 = vector.extract_strided_slice %256 {offsets = [0, 0], sizes = [8, 128], strides = [1, 1]} : vector<8x512xf32> to vector<8x128xf32>
    %cst_83 = arith.constant 5.000000e-01 : f32
    %258 = vector.broadcast %cst_83 : f32 to vector<8x128xf32>
    %259 = arith.mulf %258, %257 : vector<8x128xf32>
    %260 = math.tanh %259 : vector<8x128xf32>
    %cst_84 = arith.constant 5.000000e-01 : f32
    %261 = vector.broadcast %cst_84 : f32 to vector<8x128xf32>
    %262 = arith.mulf %261, %260 : vector<8x128xf32>
    %cst_85 = arith.constant 5.000000e-01 : f32
    %263 = vector.broadcast %cst_85 : f32 to vector<8x128xf32>
    %264 = arith.addf %262, %263 : vector<8x128xf32>
    %265 = vector.extract_strided_slice %256 {offsets = [0, 128], sizes = [8, 128], strides = [1, 1]} : vector<8x512xf32> to vector<8x128xf32>
    %cst_86 = arith.constant 5.000000e-01 : f32
    %266 = vector.broadcast %cst_86 : f32 to vector<8x128xf32>
    %267 = arith.mulf %266, %265 : vector<8x128xf32>
    %268 = math.tanh %267 : vector<8x128xf32>
    %cst_87 = arith.constant 5.000000e-01 : f32
    %269 = vector.broadcast %cst_87 : f32 to vector<8x128xf32>
    %270 = arith.mulf %269, %268 : vector<8x128xf32>
    %cst_88 = arith.constant 5.000000e-01 : f32
    %271 = vector.broadcast %cst_88 : f32 to vector<8x128xf32>
    %272 = arith.addf %270, %271 : vector<8x128xf32>
    %273 = vector.extract_strided_slice %256 {offsets = [0, 256], sizes = [8, 128], strides = [1, 1]} : vector<8x512xf32> to vector<8x128xf32>
    %274 = math.tanh %273 : vector<8x128xf32>
    %275 = vector.extract_strided_slice %256 {offsets = [0, 384], sizes = [8, 128], strides = [1, 1]} : vector<8x512xf32> to vector<8x128xf32>
    %cst_89 = arith.constant 5.000000e-01 : f32
    %276 = vector.broadcast %cst_89 : f32 to vector<8x128xf32>
    %277 = arith.mulf %276, %275 : vector<8x128xf32>
    %278 = math.tanh %277 : vector<8x128xf32>
    %cst_90 = arith.constant 5.000000e-01 : f32
    %279 = vector.broadcast %cst_90 : f32 to vector<8x128xf32>
    %280 = arith.mulf %279, %278 : vector<8x128xf32>
    %cst_91 = arith.constant 5.000000e-01 : f32
    %281 = vector.broadcast %cst_91 : f32 to vector<8x128xf32>
    %282 = arith.addf %280, %281 : vector<8x128xf32>
    %283 = arith.mulf %272, %251 : vector<8x128xf32>
    %284 = arith.mulf %264, %274 : vector<8x128xf32>
    %285 = arith.addf %283, %284 : vector<8x128xf32>
    %286 = math.tanh %285 : vector<8x128xf32>
    %287 = arith.mulf %282, %286 : vector<8x128xf32>
    %c0_92 = arith.constant 0 : index
    %c0_93 = arith.constant 0 : index
    %288 = vector.load %arg5[%c0_92, %c0_93] : memref<128x128xf32, #tpu.memory_space<vmem>>, vector<128x128xf32>
    %cst_94 = arith.constant dense<0.000000e+00> : vector<8x128xf32>
    %289 = tpu.matmul %287, %288, %cst_94 {dimension_numbers = #tpu.dot_dimension_numbers<[1], [0], [0], [1], [0, 0, 1, 1], [], []>} : vector<8x128xf32>, vector<128x128xf32>, vector<8x128xf32> -> vector<8x128xf32>
    %c0_95 = arith.constant 0 : index
    %c0_96 = arith.constant 0 : index
    %290 = vector.load %arg6[%c0_95, %c0_96] : memref<1x128xf32, #tpu.memory_space<vmem>>, vector<1x128xf32>
    %291 = vector.broadcast %290 : vector<1x128xf32> to vector<8x128xf32>
    %292 = arith.addf %289, %291 : vector<8x128xf32>
    %c0_97 = arith.constant 0 : index
    %c0_98 = arith.constant 0 : index
    %293 = vector.load %arg7[%c0_97, %c0_98] : memref<8x128xf32, #tpu.memory_space<vmem>>, vector<8x128xf32>
    tpu.vector_store %arg7[%c0_97, %c0_98], %292 {strides = array<i32>} : memref<8x128xf32, #tpu.memory_space<vmem>>, vector<8x128xf32>,
    return
  }
}

</mosaic_0001>

<bundles_post_ra>
// kernel: fwd.1
= control target key start
LH: loop header
LB: loop body
LE: loop exit
PB: predicated region body
PF: predicated region fallthrough
CT: control target
= control target key end

     0   :  { %12 = vsyncpa [#allocation3], 0  ;;  %s3525_s0 = inlined_call_operand.vmem [shape: s32[64,1], index: 0, kind: input, shape index: {}]   ;;  %s3526_s1 = inlined_call_operand.vmem [shape: f32[24,32], index: 1, kind: input, shape index: {}]   ;;  %s3527_s2 = inlined_call_operand.hbm [shape: f32[32,512], index: 2, kind: input, shape index: {}]   ;;  %s3528_s3 = inlined_call_operand.hbm [shape: f32[128,512], index: 3, kind: input, shape index: {}]   ;;  %s3529_s4 = inlined_call_operand.vmem [shape: f32[1,512], index: 4, kind: input, shape index: {}]   ;;  %s3530_s5 = inlined_call_operand.hbm [shape: f32[128,128], index: 5, kind: input, shape index: {}]   ;;  %s3531_s6 = inlined_call_operand.vmem [shape: f32[1,128], index: 6, kind: input, shape index: {}]   ;;  %s3532_s7 = inlined_call_operand.vmem [shape: f32[8,128], index: 7, kind: output, shape index: {}]  }
   0x1   :  { %13 = vsyncpa [#allocation5], 0  ;;  %s2920_s24 = smov [#allocation4]   ;;  %s2921_s26 = smov [#allocation2]  }
   0x2   :  { %s35_s25 = sshll.u32 %s2920_s24, 4  ;;  %s23_s27 = sshll.u32 %s2921_s26, 4  ;;  %s36_s25 = int_to_ptr.vmem [resolvable:$true] %s35_s25  ;;  %s2971_s27 = int_to_ptr.vmem [resolvable:$true] %s23_s27 }
   0x3   :  { %s2850_s30 = scalar_lea.hbm %s3528_s3, 8192 }
   0x4   :  { %p2851_p0 = scmp.ne.s32.totalorder %s3528_s3, %s2850_s30  ;;  %p2854_p1 = scmp.lt.u32.totalorder %s2850_s30, %s3528_s3 }
   0x6   :  { %p2856_p2 = pnand %p2854_p1, %p2851_p0 }
   0x8   :  { %2859 = shalt.err (!%p2856_p2)
}
   0x9   :  { %s2860_s12 = scalar_lea.vmem %s36_s25, 8192  ;;  %p2865_p4 = scmp.lt.s32.totalorder %s36_s25, %s36_s25 }
   0xa   :  { %p2861_p3 = scmp.ne.s32.totalorder %s36_s25, %s2860_s12  ;;  %p2866_p5 = scmp.lt.s32.totalorder %s2860_s12, %s2860_s12 }
   0xc   :  { %p2867_p6 = por %p2866_p5, %p2865_p4 }
   0xe   :  { %p2868_p7 = pnand %p2867_p6, %p2861_p3 }
  0x10   :  { %2871 = shalt.err (!%p2868_p7)
}
  0x11   :  { %s2922_s13 = smov 512   ;;  %s2923_s14 = smov 32  }
  0x12   :  { %41 = dma.hbm_to_vmem [thread:$0]  %s3528_s3, 8192, %s36_s25, [#allocation5], %s2922_s13, %s2922_s13, %s2923_s14  }
  0x13   :  { %s2872_s19 = scalar_lea.hbm %s3527_s2, 2048 }
  0x14   :  { %p2873_p8 = scmp.ne.s32.totalorder %s3527_s2, %s2872_s19  ;;  %p2876_p9 = scmp.lt.u32.totalorder %s2872_s19, %s3527_s2 }
  0x16   :  { %p2878_p10 = pnand %p2876_p9, %p2873_p8 }
  0x18   :  { %2881 = shalt.err (!%p2878_p10)
}
  0x19   :  { %s2882_s24 = scalar_lea.vmem %s2971_s27, 2048  ;;  %p2887_p12 = scmp.lt.s32.totalorder %s2971_s27, %s2971_s27 }
  0x1a   :  { %p2883_p11 = scmp.ne.s32.totalorder %s2971_s27, %s2882_s24  ;;  %p2888_p13 = scmp.lt.s32.totalorder %s2882_s24, %s2882_s24 }
  0x1c   :  { %p2889_p0 = por %p2888_p13, %p2887_p12 }
  0x1e   :  { %p2890_p1 = pnand %p2889_p0, %p2883_p11 }
  0x20   :  { %2893 = shalt.err (!%p2890_p1)
}
  0x21   :  { %29 = dma.hbm_to_vmem [thread:$0]  %s3527_s2, 2048, %s2971_s27, [#allocation3], %s2922_s13, %s2922_s13, %s2923_s14  }
  0x22   :  { %s2924_s26 = smov [#allocation6]   ;;  %s2894_s8 = scalar_lea.hbm %s3530_s5, 2048 }
  0x23   :  { %s49_s28 = sshll.u32 %s2924_s26, 4  ;;  %p2895_p2 = scmp.ne.s32.totalorder %s3530_s5, %s2894_s8  ;;  %s50_s28 = int_to_ptr.vmem [resolvable:$true] %s49_s28 }
  0x24   :  { %p2898_p3 = scmp.lt.u32.totalorder %s2894_s8, %s3530_s5 }
  0x26   :  { %p2900_p4 = pnand %p2898_p3, %p2895_p2 }
  0x28   :  { %2903 = shalt.err (!%p2900_p4)
}
  0x29   :  { %s2904_s15 = scalar_lea.vmem %s50_s28, 2048  ;;  %p2909_p6 = scmp.lt.s32.totalorder %s50_s28, %s50_s28 }
  0x2a   :  { %p2905_p5 = scmp.ne.s32.totalorder %s50_s28, %s2904_s15  ;;  %p2910_p7 = scmp.lt.s32.totalorder %s2904_s15, %s2904_s15 }
  0x2c   :  { %p2911_p8 = por %p2910_p7, %p2909_p6 }
  0x2e   :  { %p2912_p9 = pnand %p2911_p8, %p2905_p5 }
  0x30   :  { %2915 = shalt.err (!%p2912_p9)
}
  0x31   :  { %s2925_s2 = smov 128   ;;  %s2926_s27 = smov 8  }
  0x32   :  { %55 = dma.hbm_to_vmem [thread:$0]  %s3530_s5, 2048, %s50_s28, [#allocation5], %s2925_s2, %s2925_s2, %s2926_s27  }
  0x33   :  { %2916 = dma.done.wait [#allocation3], 2048  }
  0x34   :  { %2917 = vsyncadd [#allocation3], 4294965248 }
  0x35   :  { %2918 = dma.done.wait [#allocation5], 10240  }
  0x36   :  { %2919 = vsyncadd [#allocation5], 4294957056  ;;  %v2927_v0 = vmov 0   ;;  %v2928_v1 = vmov 0.0   ;;  %v69_v2 = vld [vmem:[%s3525_s0 + $0x10] sm:$0xff]  ;;  %v67_v3 = vld [vmem:[%s3525_s0] sm:$0xff]  ;;  %v75_v29 = vlaneseq }
  0x37   :  { %2769 = vset.pattern.permute.xlu1 %v2927_v0  ;;  %2768 = vset.pattern.permute.xlu0 %v2927_v0  ;;  %v70_v4 = vld [vmem:[%s3525_s0 + $0x18] sm:$0xff]  ;;  %v68_v5 = vld [vmem:[%s3525_s0 + $0x8] sm:$0xff]  ;;  %v125_v6 = vld [vmem:[%s3526_s1] sm:$0xff]  ;;  %vm128_vm0 = vcmask 195584   ;;  %vm296_vm9 = vcmask 261120   ;;  %vm2930_vm10 = vmmov 0  }
  0x38   :  { %385 = vmatprep.mubr.f32.mxu1 %v2928_v1  ;;  %84 = vperm.xlu1 %2769, %v69_v2   ;;  %v126_v7 = vld [vmem:[%s3526_s1 + $0x8] sm:$0xff]  ;;  %v127_v9 = vld [vmem:[%s3526_s1 + $0x10] sm:$0xff]  ;;  %v71_v11 = vld [vmem:[%s3525_s0 + $0x20] sm:$0xff]  ;;  %v76_v30 = vand.u32 127, %v75_v29 }
  0x39   :  { %78 = vperm.xlu0 %2768, %v67_v3   ;;  %v2137_v8 = vpack.c.bf16 %v126_v7, %v125_v6  ;;  %v72_v10 = vld [vmem:[%s3525_s0 + $0x28] sm:$0xff]  ;;  %v74_v12 = vld [vmem:[%s3525_s0 + $0x38] sm:$0xff]  ;;  %v73_v13 = vld [vmem:[%s3525_s0 + $0x30] sm:$0xff] }
  0x3a   :  { %v261_v14 = vld [vmem:[#allocation2 + $0x18] sm:$0xff]  ;;  %v259_v16 = vld [vmem:[#allocation2 + $0x8] sm:$0xff]  ;;  %v258_v20 = vld [vmem:[#allocation2] sm:$0xff] }
  0x3b   :  { %2138 = vmatprep.subr.bf16.mxu0 %v2137_v8  ;;  %v265_v15 = vld [vmem:[#allocation2 + $0x38] sm:$0xff]  ;;  %v263_v18 = vld [vmem:[#allocation2 + $0x28] sm:$0xff]  ;;  %v262_v21 = vld [vmem:[#allocation2 + $0x20] sm:$0xff] }
  0x3c   :  { %87 = vperm.xlu1 %2769, %v70_v4   ;;  %2140 = vmatpush3.bf16.msra.mxu0 %v2137_v8  ;;  %v2149_v17 = vpack.c.bf16 %v265_v15, %v261_v14  ;;  %v2141_v19 = vpack.c.bf16 %v263_v18, %v259_v16  ;;  %v267_v22 = vld [vmem:[#allocation2 + $0x48] sm:$0xff]  ;;  %v2143_v23 = vpack.c.bf16 %v262_v21, %v258_v20  ;;  %v266_v25 = vld [vmem:[#allocation2 + $0x40] sm:$0xff]  ;;  %v260_v33 = vld [vmem:[#allocation2 + $0x10] sm:$0xff] }
  0x3d   :  { %81 = vperm.xlu0 %2768, %v68_v5   ;;  %2088 = vmatprep.subr.mxu0 %v127_v9  ;;  %v271_v24 = vld [vmem:[#allocation2 + $0x68] sm:$0xff]  ;;  %v270_v26 = vld [vmem:[#allocation2 + $0x60] sm:$0xff]  ;;  %v264_v34 = vld [vmem:[#allocation2 + $0x30] sm:$0xff] }
  0x3e   :  { %2142 = vmatprep.subr.bf16.mxu1 %v2141_v19  ;;  %v2145_v27 = vpack.c.bf16 %v271_v24, %v267_v22  ;;  %v2147_v28 = vpack.c.bf16 %v270_v26, %v266_v25  ;;  %v269_v36 = vld [vmem:[#allocation2 + $0x58] sm:$0xff]  ;;  %v2151_v40 = vpack.c.bf16 %v264_v34, %v260_v33  ;;  %v268_v43 = vld [vmem:[#allocation2 + $0x50] sm:$0xff]  ;;  %v548_v56 = vld [vmem:[#allocation4 + $0x8] sm:$0xff] }
  0x3f   :  { %2144 = vmatpush1.bf16.msra.mxu1 %v2143_v23  ;;  %v273_v37 = vld [vmem:[#allocation2 + $0x78] sm:$0xff]  ;;  %v272_v44 = vld [vmem:[#allocation2 + $0x70] sm:$0xff]  ;;  %v552_v57 = vld [vmem:[#allocation4 + $0x28] sm:$0xff] }
  0x40   :  { %93 = vperm.xlu1 %2769, %v72_v10   ;;  %2089 = vmatpush3.msra.mxu0 %v127_v9  ;;  %v2153_v42 = vpack.c.bf16 %v273_v37, %v269_v36  ;;  %v2155_v49 = vpack.c.bf16 %v272_v44, %v268_v43  ;;  %v550_v58 = vld [vmem:[#allocation4 + $0x18] sm:$0xff]  ;;  %v3066_v59 = vpack.c.bf16 %v552_v57, %v548_v56  ;;  %v547_v62 = vld [vmem:[#allocation4] sm:$0xff]  ;;  %v549_v0 = vld [vmem:[#allocation4 + $0x10] sm:$0xff] }
  0x41   :  { %90 = vperm.xlu0 %2768, %v71_v11   ;;  %2150 = vmatprep.subr.bf16.mxu0 %v2149_v17  ;;  %v554_v60 = vld [vmem:[#allocation4 + $0x38] sm:$0xff]  ;;  %v551_v63 = vld [vmem:[#allocation4 + $0x20] sm:$0xff]  ;;  %v553_v2 = vld [vmem:[#allocation4 + $0x30] sm:$0xff] }
  0x42   :  { %2146 = vmatprep.subr.bf16.mxu1 %v2145_v27  ;;  %v3068_v61 = vpack.c.bf16 %v554_v60, %v550_v58  ;;  %v556_v3 = vld [vmem:[#allocation4 + $0x48] sm:$0xff]  ;;  %v558_v5 = vld [vmem:[#allocation4 + $0x58] sm:$0xff]  ;;  %v3072_v7 = vpack.c.bf16 %v551_v63, %v547_v62  ;;  %v3074_v8 = vpack.c.bf16 %v553_v2, %v549_v0  ;;  %v555_v9 = vld [vmem:[#allocation4 + $0x40] sm:$0xff] }
  0x43   :  { %2148 = vmatpush1.bf16.msra.mxu1 %v2147_v28  ;;  %v560_v4 = vld [vmem:[#allocation4 + $0x68] sm:$0xff]  ;;  %v562_v6 = vld [vmem:[#allocation4 + $0x78] sm:$0xff]  ;;  %v559_v11 = vld [vmem:[#allocation4 + $0x60] sm:$0xff] }
  0x44   :  { %99 = vperm.xlu1 %2769, %v74_v12   ;;  %2158 = vmatprep.subr.bf16.mxu1 %v3066_v59  ;;  %v557_v12 = vld [vmem:[#allocation4 + $0x50] sm:$0xff]  ;;  %v3076_v15 = vpack.c.bf16 %v560_v4, %v556_v3  ;;  %v3078_v16 = vpack.c.bf16 %v562_v6, %v558_v5  ;;  %v564_v17 = vld [vmem:[#allocation4 + $0x88] sm:$0xff]  ;;  %v566_v19 = vld [vmem:[#allocation4 + $0x98] sm:$0xff]  ;;  %v3084_v21 = vpack.c.bf16 %v559_v11, %v555_v9 }
  0x45   :  { %96 = vperm.xlu0 %2768, %v73_v13   ;;  %v561_v13 = vld [vmem:[#allocation4 + $0x70] sm:$0xff]  ;;  %v568_v18 = vld [vmem:[#allocation4 + $0xa8] sm:$0xff]  ;;  %v570_v20 = vld [vmem:[#allocation4 + $0xb8] sm:$0xff] }
  0x46   :  { %v3086_v22 = vpack.c.bf16 %v561_v13, %v557_v12  ;;  %v563_v23 = vld [vmem:[#allocation4 + $0x80] sm:$0xff]  ;;  %v565_v26 = vld [vmem:[#allocation4 + $0x90] sm:$0xff]  ;;  %v576_v33 = vld [vmem:[#allocation4 + $0xe8] sm:$0xff] }
  0x47   :  { %v567_v25 = vld [vmem:[#allocation4 + $0xa0] sm:$0xff]  ;;  %v569_v27 = vld [vmem:[#allocation4 + $0xb0] sm:$0xff]  ;;  %v574_v34 = vld [vmem:[#allocation4 + $0xd8] sm:$0xff] }
  0x48   :  { %v3100_v36 = vpack.c.bf16 %v567_v25, %v563_v23  ;;  %v3102_v37 = vpack.c.bf16 %v569_v27, %v565_v26  ;;  %v585_v56 = vld [vmem:[#allocation4 + $0x130] sm:$0xff]  ;;  %v588_v62 = vld [vmem:[#allocation4 + $0x148] sm:$0xff]  ;;  %v590_v0 = vld [vmem:[#allocation4 + $0x158] sm:$0xff] }
  0x49   :  { %v592_v63 = vld [vmem:[#allocation4 + $0x168] sm:$0xff]  ;;  %v594_v2 = vld [vmem:[#allocation4 + $0x178] sm:$0xff]  ;;  %v587_v5 = vld [vmem:[#allocation4 + $0x140] sm:$0xff] }
  0x4a   :  { %v591_v6 = vld [vmem:[#allocation4 + $0x160] sm:$0xff]  ;;  %v589_v9 = vld [vmem:[#allocation4 + $0x150] sm:$0xff]  ;;  %v3146_v11 = vpack.c.bf16 %v592_v63, %v588_v62  ;;  %v3148_v12 = vpack.c.bf16 %v594_v2, %v590_v0  ;;  %v596_v13 = vld [vmem:[#allocation4 + $0x188] sm:$0xff] }
  0x4b   :  { %v595_v23 = vld [vmem:[#allocation4 + $0x180] sm:$0xff]  ;;  %v597_v25 = vld [vmem:[#allocation4 + $0x190] sm:$0xff] }
  0x4c   :  { %v601_v26 = vld [vmem:[#allocation4 + $0x1b0] sm:$0xff] }
  0xb7   :  { %v85_v31 = vpop.permute.xlu1 %84 }
  0xb8   :  { %v79_v32 = vpop.permute.xlu0 %78  ;;  %vm103_vm2 = vcmp.eq.s32.totalorder %v76_v30, %v85_v31  ;;  %v3094_v31 = vpack.c.bf16 %v570_v20, %v566_v19  ;;  %v3154_v19 = vpack.c.bf16 %v591_v6, %v587_v5 }
  0xb9   :  { %vm101_vm1 = vcmp.eq.s32.totalorder %v76_v30, %v79_v32  ;;  %v2025_v41 = vsel %vm103_vm2, 1.0, %v2928_v1  ;;  %v572_v32 = vld [vmem:[#allocation4 + $0xc8] sm:$0xff] }
  0xba   :  { %v2023_v35 = vsel %vm101_vm1, 1.0, %v2928_v1  ;;  %v3110_v44 = vpack.c.bf16 %v576_v33, %v572_v32  ;;  %v604_v32 = vld [vmem:[#allocation4 + $0x1c8] sm:$0xff] }
  0xbb   :  { %2090 = vmatprep.mubr.msk.f32.mxu0 %vm128_vm0, %v2023_v35  ;;  %v88_v38 = vpop.permute.xlu1 %87  ;;  %v578_v35 = vld [vmem:[#allocation4 + $0xf8] sm:$0xff]  ;;  %v608_v33 = vld [vmem:[#allocation4 + $0x1e8] sm:$0xff] }
  0xbc   :  { %v82_v39 = vpop.permute.xlu0 %81  ;;  %vm104_vm3 = vcmp.eq.s32.totalorder %v76_v30, %v88_v38  ;;  %v571_v38 = vld [vmem:[#allocation4 + $0xc0] sm:$0xff] }
  0xbd   :  { %vm102_vm4 = vcmp.eq.s32.totalorder %v76_v30, %v82_v39  ;;  %v2026_v46 = vsel %vm104_vm3, 1.0, %v2928_v1 }
  0xbe   :  { %v2024_v45 = vsel %vm102_vm4, 1.0, %v2928_v1 }
  0xbf   :  { %2091 = vmatmul.mubr.msk.f32.vlgmr.msra.gmra.mrb[0].mxu0 %vm128_vm0, %v2024_v45  ;;  %v94_v47 = vpop.permute.xlu1 %93  ;;  %v3112_v45 = vpack.c.bf16 %v578_v35, %v574_v34  ;;  %v606_v34 = vld [vmem:[#allocation4 + $0x1d8] sm:$0xff] }
  0xc0   :  { %v91_v48 = vpop.permute.xlu0 %90  ;;  %2093 = vmatprep.mubr.msk.f32.mxu0 %vm128_vm0, %v2025_v41  ;;  %2152 = vmatpush1.bf16.msra.mxu0 %v2151_v40  ;;  %vm106_vm6 = vcmp.eq.s32.totalorder %v76_v30, %v94_v47  ;;  %v575_v40 = vld [vmem:[#allocation4 + $0xe0] sm:$0xff]  ;;  %v573_v41 = vld [vmem:[#allocation4 + $0xd0] sm:$0xff]  ;;  %v584_v47 = vld [vmem:[#allocation4 + $0x128] sm:$0xff] }
  0xc1   :  { %vm105_vm5 = vcmp.eq.s32.totalorder %v76_v30, %v91_v48  ;;  %2154 = vmatprep.subr.bf16.mxu0 %v2153_v42  ;;  %v2028_v53 = vsel %vm106_vm6, 1.0, %v2928_v1  ;;  %v577_v42 = vld [vmem:[#allocation4 + $0xf0] sm:$0xff]  ;;  %v582_v48 = vld [vmem:[#allocation4 + $0x118] sm:$0xff] }
  0xc2   :  { %v2027_v50 = vsel %vm105_vm5, 1.0, %v2928_v1  ;;  %v610_v35 = vld [vmem:[#allocation4 + $0x1f8] sm:$0xff] }
  0xc3   :  { %2094 = vmatmul.mubr.msk.f32.gmra.mrb[2].mxu0 %vm128_vm0, %v2026_v46  ;;  %v100_v51 = vpop.permute.xlu1 %99  ;;  %v580_v46 = vld [vmem:[#allocation4 + $0x108] sm:$0xff] }
  0xc4   :  { %2096 = vmatprep.mubr.msk.f32.mxu0 %vm128_vm0, %v2027_v50  ;;  %v97_v52 = vpop.permute.xlu0 %96  ;;  %2156 = vmatpush1.bf16.msra.mxu0 %v2155_v49  ;;  %vm108_vm8 = vcmp.eq.s32.totalorder %v76_v30, %v100_v51  ;;  %v586_v49 = vld [vmem:[#allocation4 + $0x138] sm:$0xff]  ;;  %v3118_v50 = vpack.c.bf16 %v575_v40, %v571_v38  ;;  %v3120_v51 = vpack.c.bf16 %v577_v42, %v573_v41  ;;  %v603_v41 = vld [vmem:[#allocation4 + $0x1c0] sm:$0xff] }
  0xc5   :  { %vm107_vm7 = vcmp.eq.s32.totalorder %v76_v30, %v97_v52  ;;  %v2030_v55 = vsel %vm108_vm8, 1.0, %v2928_v1  ;;  %2190 = vmatprep.subr.bf16.mxu0 %v3068_v61  ;;  %v3092_v30 = vpack.c.bf16 %v568_v18, %v564_v17  ;;  %v579_v52 = vld [vmem:[#allocation4 + $0x100] sm:$0xff]  ;;  %v3130_v58 = vpack.c.bf16 %v584_v47, %v580_v46  ;;  %v598_v17 = vld [vmem:[#allocation4 + $0x198] sm:$0xff]  ;;  %v609_v46 = vld [vmem:[#allocation4 + $0x1f0] sm:$0xff] }
  0xc6   :  { %v2029_v54 = vsel %vm107_vm7, 1.0, %v2928_v1  ;;  %v3132_v60 = vpack.c.bf16 %v586_v49, %v582_v48  ;;  %v602_v18 = vld [vmem:[#allocation4 + $0x1b8] sm:$0xff]  ;;  %v3174_v40 = vpack.c.bf16 %v601_v26, %v597_v25  ;;  %v607_v42 = vld [vmem:[#allocation4 + $0x1e0] sm:$0xff]  ;;  %v3182_v47 = vpack.c.bf16 %v610_v35, %v606_v34 }
  0xc7   :  { %2097 = vmatmul.mubr.msk.f32.gmra.mrb[4].mxu0 %vm128_vm0, %v2028_v53  ;;  %v3190_v48 = vpack.c.bf16 %v607_v42, %v603_v41 }
  0xc8   :  { %2099 = vmatprep.mubr.msk.f32.mxu0 %vm128_vm0, %v2029_v54  ;;  %v583_v54 = vld [vmem:[#allocation4 + $0x120] sm:$0xff] }
  0xc9   :  { %v3138_v3 = vpack.c.bf16 %v583_v54, %v579_v52  ;;  %v277_v52 = vshrl.u32 %v75_v29, 7  ;;  %v274_v54 = vld [vmem:[%s3529_s4] sm:$0xf] }
  0xcb   :  { %2100 = vmatmul.mubr.msk.f32.gmra.mrb[6].mxu0 %vm128_vm0, %v2030_v55  ;;  %v581_v55 = vld [vmem:[#allocation4 + $0x110] sm:$0xff] }
  0xcc   :  { %498 = vmatprep.mubr.f32.mxu0 %v2928_v1  ;;  %v3140_v4 = vpack.c.bf16 %v585_v56, %v581_v55  ;;  %v282_v55 = vsub.s32 1, %v277_v52 }
  0xce   :  { %v3250_v62 = vrot.slane %v274_v54, %v282_v55 }
 0x192   :  { %v2092_v10 = vpop.f32.mrb[0].mxu0 }
 0x193   :  { %v219_v14 = vpop.f32.mrb[1].mxu0 }
 0x194   :  { %2039 = vmatmul.mubr.msk.f32.vlgmr.msra.gmra.mrb[0].mxu1 %vm296_vm9, %v219_v14  ;;  %2047 = vmatmul.mubr.msk.f32.vlgmr.msra.gmra.mrb[8].mxu0 %vm296_vm9, %v219_v14  ;;  %v600_v14 = vld [vmem:[#allocation4 + $0x1a8] sm:$0xff] }
 0x195   :  { %2160 = vmatpush1.bf16.msra.mxu1 %v3072_v7  ;;  %2192 = vmatpush1.bf16.msra.mxu0 %v3074_v8  ;;  %v3162_v27 = vpack.c.bf16 %v600_v14, %v596_v13 }
 0x196   :  { %v2095_v24 = vpop.f32.mrb[2].mxu0  ;;  %391 = vmatprep.mubr.f32.mxu1 %v2928_v1  ;;  %504 = vmatprep.mubr.f32.mxu0 %v2928_v1 }
 0x197   :  { %v229_v28 = vpop.f32.mrb[3].mxu0  ;;  %2162 = vmatprep.subr.bf16.mxu1 %v3076_v15  ;;  %2194 = vmatprep.subr.bf16.mxu0 %v3078_v16 }
 0x198   :  { %2040 = vmatmul.mubr.msk.f32.gmra.mrb[2].mxu1 %vm296_vm9, %v2092_v10  ;;  %2048 = vmatmul.mubr.msk.f32.gmra.mrb[10].mxu0 %vm296_vm9, %v2092_v10  ;;  %v593_v10 = vld [vmem:[#allocation4 + $0x170] sm:$0xff] }
 0x199   :  { %2164 = vmatpush1.bf16.msra.mxu1 %v3084_v21  ;;  %2196 = vmatpush1.bf16.msra.mxu0 %v3086_v22  ;;  %v3156_v20 = vpack.c.bf16 %v593_v10, %v589_v9  ;;  %v290_v9 = vsub.s32 3, %v277_v52 }
 0x19a   :  { %v3104_v39 = vpop.f32.mrb[4].mxu0  ;;  %397 = vmatprep.mubr.f32.mxu1 %v2928_v1  ;;  %510 = vmatprep.mubr.f32.mxu0 %v2928_v1 }
 0x19b   :  { %v239_v43 = vpop.f32.mrb[5].mxu0  ;;  %2166 = vmatprep.subr.bf16.mxu1 %v3092_v30  ;;  %2198 = vmatprep.subr.bf16.mxu0 %v3094_v31 }
 0x19c   :  { %2041 = vmatmul.mubr.msk.f32.gmra.mrb[4].mxu1 %vm296_vm9, %v229_v28  ;;  %2049 = vmatmul.mubr.msk.f32.gmra.mrb[12].mxu0 %vm296_vm9, %v229_v28  ;;  %v3164_v28 = vpack.c.bf16 %v602_v18, %v598_v17  ;;  %v3257_v18 = vrot.slane %v274_v54, %v290_v9 }
 0x19d   :  { %2168 = vmatpush1.bf16.msra.mxu1 %v3100_v36  ;;  %2200 = vmatpush1.bf16.msra.mxu0 %v3102_v37 }
 0x19e   :  { %v3122_v53 = vpop.f32.mrb[6].mxu0  ;;  %403 = vmatprep.mubr.f32.mxu1 %v2928_v1  ;;  %516 = vmatprep.mubr.f32.mxu0 %v2928_v1 }
 0x19f   :  { %v3126_v57 = vpop.f32.mrb[7].mxu0  ;;  %2170 = vmatprep.subr.bf16.mxu1 %v3110_v44  ;;  %2202 = vmatprep.subr.bf16.mxu0 %v3112_v45 }
 0x1a0   :  { %2042 = vmatmul.mubr.msk.f32.gmra.mrb[6].mxu1 %vm296_vm9, %v2095_v24  ;;  %2050 = vmatmul.mubr.msk.f32.gmra.mrb[14].mxu0 %vm296_vm9, %v2095_v24  ;;  %v599_v24 = vld [vmem:[#allocation4 + $0x1a0] sm:$0xff] }
 0x1a1   :  { %2172 = vmatpush1.bf16.msra.mxu1 %v3118_v50  ;;  %2204 = vmatpush1.bf16.msra.mxu0 %v3120_v51  ;;  %v3172_v38 = vpack.c.bf16 %v599_v24, %v595_v23 }
 0x1a2   :  { %409 = vmatprep.mubr.f32.mxu1 %v2928_v1  ;;  %522 = vmatprep.mubr.f32.mxu0 %v2928_v1 }
 0x1a3   :  { %2174 = vmatprep.subr.bf16.mxu1 %v3130_v58  ;;  %2206 = vmatprep.subr.bf16.mxu0 %v3132_v60 }
 0x1a4   :  { %2043 = vmatmul.mubr.msk.f32.gmra.mrb[8].mxu1 %vm296_vm9, %v239_v43  ;;  %2051 = vmatmul.mubr.msk.f32.gmra.mrb[16].mxu0 %vm296_vm9, %v239_v43  ;;  %v605_v43 = vld [vmem:[#allocation4 + $0x1d0] sm:$0xff] }
 0x1a5   :  { %2176 = vmatpush1.bf16.msra.mxu1 %v3138_v3  ;;  %2208 = vmatpush1.bf16.msra.mxu0 %v3140_v4  ;;  %v3192_v49 = vpack.c.bf16 %v609_v46, %v605_v43 }
 0x1a6   :  { %415 = vmatprep.mubr.f32.mxu1 %v2928_v1  ;;  %528 = vmatprep.mubr.f32.mxu0 %v2928_v1 }
 0x1a7   :  { %2178 = vmatprep.subr.bf16.mxu1 %v3146_v11  ;;  %2210 = vmatprep.subr.bf16.mxu0 %v3148_v12 }
 0x1a8   :  { %2044 = vmatmul.mubr.msk.f32.gmra.mrb[10].mxu1 %vm296_vm9, %v3104_v39  ;;  %2052 = vmatmul.mubr.msk.f32.gmra.mrb[18].mxu0 %vm296_vm9, %v3104_v39  ;;  %v3180_v39 = vpack.c.bf16 %v608_v33, %v604_v32 }
 0x1a9   :  { %2180 = vmatpush1.bf16.msra.mxu1 %v3154_v19  ;;  %2212 = vmatpush1.bf16.msra.mxu0 %v3156_v20 }
 0x1aa   :  { %421 = vmatprep.mubr.f32.mxu1 %v2928_v1  ;;  %534 = vmatprep.mubr.f32.mxu0 %v2928_v1 }
 0x1ab   :  { %2182 = vmatprep.subr.bf16.mxu1 %v3162_v27  ;;  %2214 = vmatprep.subr.bf16.mxu0 %v3164_v28 }
 0x1ac   :  { %2045 = vmatmul.mubr.msk.f32.gmra.mrb[12].mxu1 %vm296_vm9, %v3126_v57  ;;  %2053 = vmatmul.mubr.msk.f32.gmra.mrb[20].mxu0 %vm296_vm9, %v3126_v57  ;;  %v286_v57 = vsub.s32 2, %v277_v52 }
 0x1ad   :  { %2184 = vmatpush1.bf16.msra.mxu1 %v3172_v38  ;;  %2216 = vmatpush1.bf16.msra.mxu0 %v3174_v40 }
 0x1ae   :  { %427 = vmatprep.mubr.f32.mxu1 %v2928_v1  ;;  %540 = vmatprep.mubr.f32.mxu0 %v2928_v1  ;;  %v3253_v5 = vrot.slane %v274_v54, %v286_v57 }
 0x1af   :  { %2186 = vmatprep.subr.bf16.mxu1 %v3180_v39  ;;  %2218 = vmatprep.subr.bf16.mxu0 %v3182_v47 }
 0x1b0   :  { %2046 = vmatmul.mubr.msk.f32.gmra.mrb[14].mxu1 %vm296_vm9, %v3122_v53  ;;  %2054 = vmatmul.mubr.msk.f32.gmra.mrb[22].mxu0 %vm296_vm9, %v3122_v53  ;;  %v278_v53 = vsub.s32 0, %v277_v52 }
 0x1b1   :  { %2188 = vmatpush1.bf16.msra.mxu1 %v3190_v48  ;;  %2220 = vmatpush1.bf16.msra.mxu0 %v3192_v49 }
 0x1b2   :  { %675 = vmatprep.mubr.f32.mxu1 %v2928_v1  ;;  %746 = vmatprep.mubr.f32.mxu0 %v2928_v1  ;;  %v3248_v56 = vrot.slane %v274_v54, %v278_v53 }
 0x1b3   :  { %2222 = vmatprep.subr.bf16.mxu1 %v3066_v59  ;;  %2254 = vmatprep.subr.bf16.mxu0 %v3068_v61 }
 0x1b4   :  { %676 = vmatmul.mubr.f32.vlgmr.msra.gmra.mrb[0].mxu1 %v2928_v1  ;;  %747 = vmatmul.mubr.f32.vlgmr.msra.gmra.mrb[8].mxu0 %v2928_v1 }
 0x1b5   :  { %2224 = vmatpush1.bf16.msra.mxu1 %v3072_v7  ;;  %2256 = vmatpush1.bf16.msra.mxu0 %v3074_v8 }
 0x1b6   :  { %2226 = vmatprep.subr.bf16.mxu1 %v3076_v15  ;;  %2258 = vmatprep.subr.bf16.mxu0 %v3078_v16 }
 0x1b7   :  { %839 = vmatprep.mubr.f32.mxu1 %v2928_v1  ;;  %910 = vmatprep.mubr.f32.mxu0 %v2928_v1 }
 0x1b9   :  { %2228 = vmatpush1.bf16.msra.mxu1 %v3084_v21  ;;  %2260 = vmatpush1.bf16.msra.mxu0 %v3086_v22 }
 0x1ba   :  { %2230 = vmatprep.subr.bf16.mxu1 %v3092_v30  ;;  %2262 = vmatprep.subr.bf16.mxu0 %v3094_v31 }
 0x1bd   :  { %2232 = vmatpush1.bf16.msra.mxu1 %v3100_v36  ;;  %2264 = vmatpush1.bf16.msra.mxu0 %v3102_v37 }
 0x1be   :  { %2234 = vmatprep.subr.bf16.mxu1 %v3110_v44  ;;  %2266 = vmatprep.subr.bf16.mxu0 %v3112_v45 }
 0x1c1   :  { %2236 = vmatpush1.bf16.msra.mxu1 %v3118_v50  ;;  %2268 = vmatpush1.bf16.msra.mxu0 %v3120_v51 }
 0x1c2   :  { %2238 = vmatprep.subr.bf16.mxu1 %v3130_v58  ;;  %2270 = vmatprep.subr.bf16.mxu0 %v3132_v60 }
 0x1c5   :  { %2240 = vmatpush1.bf16.msra.mxu1 %v3138_v3  ;;  %2272 = vmatpush1.bf16.msra.mxu0 %v3140_v4 }
 0x1c6   :  { %2242 = vmatprep.subr.bf16.mxu1 %v3146_v11  ;;  %2274 = vmatprep.subr.bf16.mxu0 %v3148_v12 }
 0x1c9   :  { %2244 = vmatpush1.bf16.msra.mxu1 %v3154_v19  ;;  %2276 = vmatpush1.bf16.msra.mxu0 %v3156_v20 }
 0x1ca   :  { %2246 = vmatprep.subr.bf16.mxu1 %v3162_v27  ;;  %2278 = vmatprep.subr.bf16.mxu0 %v3164_v28 }
 0x1cd   :  { %2248 = vmatpush1.bf16.msra.mxu1 %v3172_v38  ;;  %2280 = vmatpush1.bf16.msra.mxu0 %v3174_v40 }
 0x1ce   :  { %2250 = vmatprep.subr.bf16.mxu1 %v3180_v39  ;;  %2282 = vmatprep.subr.bf16.mxu0 %v3182_v47 }
 0x1d1   :  { %2252 = vmatpush1.bf16.msra.mxu1 %v3190_v48  ;;  %2284 = vmatpush1.bf16.msra.mxu0 %v3192_v49 }
 0x1d2   :  { %2286 = vmatprep.subr.bf16.mxu1 %v3066_v59  ;;  %2318 = vmatprep.subr.bf16.mxu0 %v3068_v61 }
 0x287   :  { %v677_v63 = vpop.f32.mrb[0].mxu1  ;;  %v748_v0 = vpop.f32.mrb[8].mxu0 }
 0x288   :  { %v2693_v2 = vadd.f32 %v677_v63, %v3248_v56  ;;  %v679_v6 = vpop.f32.mrb[1].mxu1  ;;  %v750_v29 = vpop.f32.mrb[9].mxu0  ;;  %v2709_v17 = vadd.f32 %v748_v0, %v3253_v5 }
 0x289   :  { %v2694_v10 = vadd.f32 %v679_v6, %v3250_v62  ;;  %v2710_v23 = vadd.f32 %v750_v29, %v3257_v18 }
 0x28a   :  { %v757_v13 = vmul.f32 0.5, %v2693_v2 }
 0x28b   :  { %v761_v14 = vmul.f32 0.5, %v2694_v10  ;;  %v766_v24 = vmul.f32 0.5, %v2710_v23 }
 0x28c   :  { %2770 = vtanh.f32 %v757_v13 }
 0x28d   :  { %2772 = vtanh.f32 %v761_v14 }
 0x28e   :  { %2774 = vtanh.f32 %v2709_v17 }
 0x28f   :  { %2776 = vtanh.f32 %v766_v24 }
 0x296   :  { %v2771_v25 = vpop.eup %2770 }
 0x297   :  { %v2773_v26 = vpop.eup %2772  ;;  %v759_v32 = vmul.f32 0.5, %v2771_v25 }
 0x298   :  { %v763_v33 = vmul.f32 0.5, %v2773_v26  ;;  %v2775_v35 = vpop.eup %2774 }
 0x299   :  { %v760_v34 = vadd.f32 0.5, %v759_v32  ;;  %v2777_v52 = vpop.eup %2776 }
 0x29a   :  { %v764_v41 = vadd.f32 0.5, %v763_v33  ;;  %v768_v53 = vmul.f32 0.5, %v2777_v52 }
 0x29b   :  { %v771_v42 = vmul.f32 %v2775_v35, %v760_v34 }
 0x29c   :  { %v770_v43 = vmul.f32 0.0, %v764_v41  ;;  %v769_v54 = vadd.f32 0.5, %v768_v53 }
 0x29e   :  { %v3260_v46 = vadd.f32 %v771_v42, %v770_v43 }
 0x2a0   :  { %2778 = vtanh.f32 %v3260_v46 }
 0x2aa   :  { %v2779_v55 = vpop.eup %2778 }
 0x2ab   :  { %v774_v57 = vmul.f32 %v2779_v55, %v769_v54 }
 0x2ad   :  { %840 = vmatmul.mubr.f32.vlgmr.msra.gmra.mrb[2].mxu1 %v774_v57  ;;  %911 = vmatmul.mubr.f32.vlgmr.msra.gmra.mrb[10].mxu0 %v774_v57 }
 0x2ae   :  { %2288 = vmatpush1.bf16.msra.mxu1 %v3072_v7  ;;  %2320 = vmatpush1.bf16.msra.mxu0 %v3074_v8 }
 0x2af   :  { %2290 = vmatprep.subr.bf16.mxu1 %v3076_v15  ;;  %2322 = vmatprep.subr.bf16.mxu0 %v3078_v16 }
 0x2b0   :  { %1003 = vmatprep.mubr.f32.mxu1 %v2928_v1  ;;  %1074 = vmatprep.mubr.f32.mxu0 %v2928_v1 }
 0x2b2   :  { %2292 = vmatpush1.bf16.msra.mxu1 %v3084_v21  ;;  %2324 = vmatpush1.bf16.msra.mxu0 %v3086_v22 }
 0x2b3   :  { %2294 = vmatprep.subr.bf16.mxu1 %v3092_v30  ;;  %2326 = vmatprep.subr.bf16.mxu0 %v3094_v31 }
 0x2b6   :  { %2296 = vmatpush1.bf16.msra.mxu1 %v3100_v36  ;;  %2328 = vmatpush1.bf16.msra.mxu0 %v3102_v37 }
 0x2b7   :  { %2298 = vmatprep.subr.bf16.mxu1 %v3110_v44  ;;  %2330 = vmatprep.subr.bf16.mxu0 %v3112_v45 }
 0x2ba   :  { %2300 = vmatpush1.bf16.msra.mxu1 %v3118_v50  ;;  %2332 = vmatpush1.bf16.msra.mxu0 %v3120_v51 }
 0x2bb   :  { %2302 = vmatprep.subr.bf16.mxu1 %v3130_v58  ;;  %2334 = vmatprep.subr.bf16.mxu0 %v3132_v60 }
 0x2be   :  { %2304 = vmatpush1.bf16.msra.mxu1 %v3138_v3  ;;  %2336 = vmatpush1.bf16.msra.mxu0 %v3140_v4 }
 0x2bf   :  { %2306 = vmatprep.subr.bf16.mxu1 %v3146_v11  ;;  %2338 = vmatprep.subr.bf16.mxu0 %v3148_v12 }
 0x2c2   :  { %2308 = vmatpush1.bf16.msra.mxu1 %v3154_v19  ;;  %2340 = vmatpush1.bf16.msra.mxu0 %v3156_v20 }
 0x2c3   :  { %2310 = vmatprep.subr.bf16.mxu1 %v3162_v27  ;;  %2342 = vmatprep.subr.bf16.mxu0 %v3164_v28 }
 0x2c6   :  { %2312 = vmatpush1.bf16.msra.mxu1 %v3172_v38  ;;  %2344 = vmatpush1.bf16.msra.mxu0 %v3174_v40 }
 0x2c7   :  { %2314 = vmatprep.subr.bf16.mxu1 %v3180_v39  ;;  %2346 = vmatprep.subr.bf16.mxu0 %v3182_v47 }
 0x2ca   :  { %2316 = vmatpush1.bf16.msra.mxu1 %v3190_v48  ;;  %2348 = vmatpush1.bf16.msra.mxu0 %v3192_v49 }
 0x2cb   :  { %2350 = vmatprep.subr.bf16.mxu1 %v3066_v59  ;;  %2382 = vmatprep.subr.bf16.mxu0 %v3068_v61 }
 0x380   :  { %v841_v63 = vpop.f32.mrb[2].mxu1  ;;  %v912_v0 = vpop.f32.mrb[10].mxu0 }
 0x381   :  { %v2695_v2 = vadd.f32 %v841_v63, %v3248_v56  ;;  %v843_v6 = vpop.f32.mrb[3].mxu1  ;;  %v914_v9 = vpop.f32.mrb[11].mxu0  ;;  %v2711_v14 = vadd.f32 %v912_v0, %v3253_v5 }
 0x382   :  { %v2696_v29 = vadd.f32 %v843_v6, %v3250_v62  ;;  %v2712_v17 = vadd.f32 %v914_v9, %v3257_v18 }
 0x383   :  { %v921_v10 = vmul.f32 0.5, %v2695_v2 }
 0x384   :  { %v925_v13 = vmul.f32 0.5, %v2696_v29  ;;  %v930_v23 = vmul.f32 0.5, %v2712_v17 }
 0x385   :  { %2780 = vtanh.f32 %v921_v10 }
 0x386   :  { %2782 = vtanh.f32 %v925_v13 }
 0x387   :  { %2784 = vtanh.f32 %v2711_v14 }
 0x388   :  { %2786 = vtanh.f32 %v930_v23 }
 0x38f   :  { %v2781_v24 = vpop.eup %2780 }
 0x390   :  { %v2783_v25 = vpop.eup %2782  ;;  %v923_v26 = vmul.f32 0.5, %v2781_v24 }
 0x391   :  { %v927_v32 = vmul.f32 0.5, %v2783_v25  ;;  %v2785_v34 = vpop.eup %2784 }
 0x392   :  { %v924_v33 = vadd.f32 0.5, %v923_v26  ;;  %v2787_v52 = vpop.eup %2786 }
 0x393   :  { %v928_v35 = vadd.f32 0.5, %v927_v32  ;;  %v932_v53 = vmul.f32 0.5, %v2787_v52 }
 0x394   :  { %v935_v41 = vmul.f32 %v2785_v34, %v924_v33 }
 0x395   :  { %v934_v42 = vmul.f32 %v928_v35, %v3260_v46  ;;  %v933_v54 = vadd.f32 0.5, %v932_v53 }
 0x397   :  { %v3302_v43 = vadd.f32 %v935_v41, %v934_v42 }
 0x399   :  { %2788 = vtanh.f32 %v3302_v43 }
 0x3a3   :  { %v2789_v55 = vpop.eup %2788 }
 0x3a4   :  { %v938_v57 = vmul.f32 %v2789_v55, %v933_v54 }
 0x3a6   :  { %1004 = vmatmul.mubr.f32.vlgmr.msra.gmra.mrb[4].mxu1 %v938_v57  ;;  %1075 = vmatmul.mubr.f32.vlgmr.msra.gmra.mrb[12].mxu0 %v938_v57 }
 0x3a7   :  { %2352 = vmatpush1.bf16.msra.mxu1 %v3072_v7  ;;  %2384 = vmatpush1.bf16.msra.mxu0 %v3074_v8 }
 0x3a8   :  { %2354 = vmatprep.subr.bf16.mxu1 %v3076_v15  ;;  %2386 = vmatprep.subr.bf16.mxu0 %v3078_v16 }
 0x3a9   :  { %1167 = vmatprep.mubr.f32.mxu1 %v2928_v1  ;;  %1238 = vmatprep.mubr.f32.mxu0 %v2928_v1 }
 0x3ab   :  { %2356 = vmatpush1.bf16.msra.mxu1 %v3084_v21  ;;  %2388 = vmatpush1.bf16.msra.mxu0 %v3086_v22 }
 0x3ac   :  { %2358 = vmatprep.subr.bf16.mxu1 %v3092_v30  ;;  %2390 = vmatprep.subr.bf16.mxu0 %v3094_v31 }
 0x3af   :  { %2360 = vmatpush1.bf16.msra.mxu1 %v3100_v36  ;;  %2392 = vmatpush1.bf16.msra.mxu0 %v3102_v37 }
 0x3b0   :  { %2362 = vmatprep.subr.bf16.mxu1 %v3110_v44  ;;  %2394 = vmatprep.subr.bf16.mxu0 %v3112_v45 }
 0x3b3   :  { %2364 = vmatpush1.bf16.msra.mxu1 %v3118_v50  ;;  %2396 = vmatpush1.bf16.msra.mxu0 %v3120_v51 }
 0x3b4   :  { %2366 = vmatprep.subr.bf16.mxu1 %v3130_v58  ;;  %2398 = vmatprep.subr.bf16.mxu0 %v3132_v60 }
 0x3b7   :  { %2368 = vmatpush1.bf16.msra.mxu1 %v3138_v3  ;;  %2400 = vmatpush1.bf16.msra.mxu0 %v3140_v4 }
 0x3b8   :  { %2370 = vmatprep.subr.bf16.mxu1 %v3146_v11  ;;  %2402 = vmatprep.subr.bf16.mxu0 %v3148_v12 }
 0x3bb   :  { %2372 = vmatpush1.bf16.msra.mxu1 %v3154_v19  ;;  %2404 = vmatpush1.bf16.msra.mxu0 %v3156_v20 }
 0x3bc   :  { %2374 = vmatprep.subr.bf16.mxu1 %v3162_v27  ;;  %2406 = vmatprep.subr.bf16.mxu0 %v3164_v28 }
 0x3bf   :  { %2376 = vmatpush1.bf16.msra.mxu1 %v3172_v38  ;;  %2408 = vmatpush1.bf16.msra.mxu0 %v3174_v40 }
 0x3c0   :  { %2378 = vmatprep.subr.bf16.mxu1 %v3180_v39  ;;  %2410 = vmatprep.subr.bf16.mxu0 %v3182_v47 }
 0x3c3   :  { %2380 = vmatpush1.bf16.msra.mxu1 %v3190_v48  ;;  %2412 = vmatpush1.bf16.msra.mxu0 %v3192_v49 }
 0x3c4   :  { %2414 = vmatprep.subr.bf16.mxu1 %v3066_v59  ;;  %2446 = vmatprep.subr.bf16.mxu0 %v3068_v61 }
 0x479   :  { %v1005_v46 = vpop.f32.mrb[4].mxu1  ;;  %v1076_v63 = vpop.f32.mrb[12].mxu0 }
 0x47a   :  { %v2697_v0 = vadd.f32 %v1005_v46, %v3248_v56  ;;  %v1007_v2 = vpop.f32.mrb[5].mxu1  ;;  %v1078_v6 = vpop.f32.mrb[13].mxu0  ;;  %v2713_v13 = vadd.f32 %v1076_v63, %v3253_v5 }
 0x47b   :  { %v2698_v9 = vadd.f32 %v1007_v2, %v3250_v62  ;;  %v2714_v14 = vadd.f32 %v1078_v6, %v3257_v18 }
 0x47c   :  { %v1085_v29 = vmul.f32 0.5, %v2697_v0 }
 0x47d   :  { %v1089_v10 = vmul.f32 0.5, %v2698_v9  ;;  %v1094_v17 = vmul.f32 0.5, %v2714_v14 }
 0x47e   :  { %2790 = vtanh.f32 %v1085_v29 }
 0x47f   :  { %2792 = vtanh.f32 %v1089_v10 }
 0x480   :  { %2794 = vtanh.f32 %v2713_v13 }
 0x481   :  { %2796 = vtanh.f32 %v1094_v17 }
 0x488   :  { %v2791_v23 = vpop.eup %2790 }
 0x489   :  { %v2793_v24 = vpop.eup %2792  ;;  %v1087_v25 = vmul.f32 0.5, %v2791_v23 }
 0x48a   :  { %v1091_v26 = vmul.f32 0.5, %v2793_v24  ;;  %v2795_v33 = vpop.eup %2794 }
 0x48b   :  { %v1088_v32 = vadd.f32 0.5, %v1087_v25  ;;  %v2797_v52 = vpop.eup %2796 }
 0x48c   :  { %v1092_v34 = vadd.f32 0.5, %v1091_v26  ;;  %v1096_v53 = vmul.f32 0.5, %v2797_v52 }
 0x48d   :  { %v1099_v35 = vmul.f32 %v2795_v33, %v1088_v32 }
 0x48e   :  { %v1098_v41 = vmul.f32 %v1092_v34, %v3302_v43  ;;  %v1097_v54 = vadd.f32 0.5, %v1096_v53 }
 0x490   :  { %v3344_v42 = vadd.f32 %v1099_v35, %v1098_v41 }
 0x492   :  { %2798 = vtanh.f32 %v3344_v42 }
 0x49c   :  { %v2799_v55 = vpop.eup %2798 }
 0x49d   :  { %v1102_v57 = vmul.f32 %v2799_v55, %v1097_v54 }
 0x49f   :  { %1168 = vmatmul.mubr.f32.vlgmr.msra.gmra.mrb[6].mxu1 %v1102_v57  ;;  %1239 = vmatmul.mubr.f32.vlgmr.msra.gmra.mrb[14].mxu0 %v1102_v57 }
 0x4a0   :  { %2416 = vmatpush1.bf16.msra.mxu1 %v3072_v7  ;;  %2448 = vmatpush1.bf16.msra.mxu0 %v3074_v8 }
 0x4a1   :  { %2418 = vmatprep.subr.bf16.mxu1 %v3076_v15  ;;  %2450 = vmatprep.subr.bf16.mxu0 %v3078_v16 }
 0x4a2   :  { %1331 = vmatprep.mubr.f32.mxu1 %v2928_v1  ;;  %1402 = vmatprep.mubr.f32.mxu0 %v2928_v1 }
 0x4a4   :  { %2420 = vmatpush1.bf16.msra.mxu1 %v3084_v21  ;;  %2452 = vmatpush1.bf16.msra.mxu0 %v3086_v22 }
 0x4a5   :  { %2422 = vmatprep.subr.bf16.mxu1 %v3092_v30  ;;  %2454 = vmatprep.subr.bf16.mxu0 %v3094_v31 }
 0x4a8   :  { %2424 = vmatpush1.bf16.msra.mxu1 %v3100_v36  ;;  %2456 = vmatpush1.bf16.msra.mxu0 %v3102_v37 }
 0x4a9   :  { %2426 = vmatprep.subr.bf16.mxu1 %v3110_v44  ;;  %2458 = vmatprep.subr.bf16.mxu0 %v3112_v45 }
 0x4ac   :  { %2428 = vmatpush1.bf16.msra.mxu1 %v3118_v50  ;;  %2460 = vmatpush1.bf16.msra.mxu0 %v3120_v51 }
 0x4ad   :  { %2430 = vmatprep.subr.bf16.mxu1 %v3130_v58  ;;  %2462 = vmatprep.subr.bf16.mxu0 %v3132_v60 }
 0x4b0   :  { %2432 = vmatpush1.bf16.msra.mxu1 %v3138_v3  ;;  %2464 = vmatpush1.bf16.msra.mxu0 %v3140_v4 }
 0x4b1   :  { %2434 = vmatprep.subr.bf16.mxu1 %v3146_v11  ;;  %2466 = vmatprep.subr.bf16.mxu0 %v3148_v12 }
 0x4b4   :  { %2436 = vmatpush1.bf16.msra.mxu1 %v3154_v19  ;;  %2468 = vmatpush1.bf16.msra.mxu0 %v3156_v20 }
 0x4b5   :  { %2438 = vmatprep.subr.bf16.mxu1 %v3162_v27  ;;  %2470 = vmatprep.subr.bf16.mxu0 %v3164_v28 }
 0x4b8   :  { %2440 = vmatpush1.bf16.msra.mxu1 %v3172_v38  ;;  %2472 = vmatpush1.bf16.msra.mxu0 %v3174_v40 }
 0x4b9   :  { %2442 = vmatprep.subr.bf16.mxu1 %v3180_v39  ;;  %2474 = vmatprep.subr.bf16.mxu0 %v3182_v47 }
 0x4bc   :  { %2444 = vmatpush1.bf16.msra.mxu1 %v3190_v48  ;;  %2476 = vmatpush1.bf16.msra.mxu0 %v3192_v49 }
 0x4bd   :  { %2478 = vmatprep.subr.bf16.mxu1 %v3066_v59  ;;  %2510 = vmatprep.subr.bf16.mxu0 %v3068_v61 }
 0x572   :  { %v1169_v43 = vpop.f32.mrb[6].mxu1  ;;  %v1240_v46 = vpop.f32.mrb[14].mxu0 }
 0x573   :  { %v2699_v63 = vadd.f32 %v1169_v43, %v3248_v56  ;;  %v1171_v0 = vpop.f32.mrb[7].mxu1  ;;  %v1242_v2 = vpop.f32.mrb[15].mxu0  ;;  %v2715_v10 = vadd.f32 %v1240_v46, %v3253_v5 }
 0x574   :  { %v2700_v6 = vadd.f32 %v1171_v0, %v3250_v62  ;;  %v2716_v13 = vadd.f32 %v1242_v2, %v3257_v18 }
 0x575   :  { %v1249_v9 = vmul.f32 0.5, %v2699_v63 }
 0x576   :  { %v1253_v29 = vmul.f32 0.5, %v2700_v6  ;;  %v1258_v14 = vmul.f32 0.5, %v2716_v13 }
 0x577   :  { %2800 = vtanh.f32 %v1249_v9 }
 0x578   :  { %2802 = vtanh.f32 %v1253_v29 }
 0x579   :  { %2804 = vtanh.f32 %v2715_v10 }
 0x57a   :  { %2806 = vtanh.f32 %v1258_v14 }
 0x581   :  { %v2801_v17 = vpop.eup %2800 }
 0x582   :  { %v2803_v23 = vpop.eup %2802  ;;  %v1251_v24 = vmul.f32 0.5, %v2801_v17 }
 0x583   :  { %v1255_v25 = vmul.f32 0.5, %v2803_v23  ;;  %v2805_v32 = vpop.eup %2804 }
 0x584   :  { %v1252_v26 = vadd.f32 0.5, %v1251_v24  ;;  %v2807_v52 = vpop.eup %2806 }
 0x585   :  { %v1256_v33 = vadd.f32 0.5, %v1255_v25  ;;  %v1260_v53 = vmul.f32 0.5, %v2807_v52 }
 0x586   :  { %v1263_v34 = vmul.f32 %v2805_v32, %v1252_v26 }
 0x587   :  { %v1262_v35 = vmul.f32 %v1256_v33, %v3344_v42  ;;  %v1261_v54 = vadd.f32 0.5, %v1260_v53 }
 0x589   :  { %v3386_v41 = vadd.f32 %v1263_v34, %v1262_v35 }
 0x58b   :  { %2808 = vtanh.f32 %v3386_v41 }
 0x595   :  { %v2809_v55 = vpop.eup %2808 }
 0x596   :  { %v1266_v57 = vmul.f32 %v2809_v55, %v1261_v54 }
 0x598   :  { %1332 = vmatmul.mubr.f32.vlgmr.msra.gmra.mrb[8].mxu1 %v1266_v57  ;;  %1403 = vmatmul.mubr.f32.vlgmr.msra.gmra.mrb[16].mxu0 %v1266_v57 }
 0x599   :  { %2480 = vmatpush1.bf16.msra.mxu1 %v3072_v7  ;;  %2512 = vmatpush1.bf16.msra.mxu0 %v3074_v8 }
 0x59a   :  { %2482 = vmatprep.subr.bf16.mxu1 %v3076_v15  ;;  %2514 = vmatprep.subr.bf16.mxu0 %v3078_v16 }
 0x59b   :  { %1495 = vmatprep.mubr.f32.mxu1 %v2928_v1  ;;  %1566 = vmatprep.mubr.f32.mxu0 %v2928_v1 }
 0x59d   :  { %2484 = vmatpush1.bf16.msra.mxu1 %v3084_v21  ;;  %2516 = vmatpush1.bf16.msra.mxu0 %v3086_v22 }
 0x59e   :  { %2486 = vmatprep.subr.bf16.mxu1 %v3092_v30  ;;  %2518 = vmatprep.subr.bf16.mxu0 %v3094_v31 }
 0x5a1   :  { %2488 = vmatpush1.bf16.msra.mxu1 %v3100_v36  ;;  %2520 = vmatpush1.bf16.msra.mxu0 %v3102_v37 }
 0x5a2   :  { %2490 = vmatprep.subr.bf16.mxu1 %v3110_v44  ;;  %2522 = vmatprep.subr.bf16.mxu0 %v3112_v45 }
 0x5a5   :  { %2492 = vmatpush1.bf16.msra.mxu1 %v3118_v50  ;;  %2524 = vmatpush1.bf16.msra.mxu0 %v3120_v51 }
 0x5a6   :  { %2494 = vmatprep.subr.bf16.mxu1 %v3130_v58  ;;  %2526 = vmatprep.subr.bf16.mxu0 %v3132_v60 }
 0x5a9   :  { %2496 = vmatpush1.bf16.msra.mxu1 %v3138_v3  ;;  %2528 = vmatpush1.bf16.msra.mxu0 %v3140_v4 }
 0x5aa   :  { %2498 = vmatprep.subr.bf16.mxu1 %v3146_v11  ;;  %2530 = vmatprep.subr.bf16.mxu0 %v3148_v12 }
 0x5ad   :  { %2500 = vmatpush1.bf16.msra.mxu1 %v3154_v19  ;;  %2532 = vmatpush1.bf16.msra.mxu0 %v3156_v20 }
 0x5ae   :  { %2502 = vmatprep.subr.bf16.mxu1 %v3162_v27  ;;  %2534 = vmatprep.subr.bf16.mxu0 %v3164_v28 }
 0x5b1   :  { %2504 = vmatpush1.bf16.msra.mxu1 %v3172_v38  ;;  %2536 = vmatpush1.bf16.msra.mxu0 %v3174_v40 }
 0x5b2   :  { %2506 = vmatprep.subr.bf16.mxu1 %v3180_v39  ;;  %2538 = vmatprep.subr.bf16.mxu0 %v3182_v47 }
 0x5b5   :  { %2508 = vmatpush1.bf16.msra.mxu1 %v3190_v48  ;;  %2540 = vmatpush1.bf16.msra.mxu0 %v3192_v49 }
 0x5b6   :  { %2542 = vmatprep.subr.bf16.mxu1 %v3066_v59  ;;  %2574 = vmatprep.subr.bf16.mxu0 %v3068_v61 }
 0x66b   :  { %v1333_v42 = vpop.f32.mrb[8].mxu1  ;;  %v1404_v43 = vpop.f32.mrb[16].mxu0 }
 0x66c   :  { %v2701_v46 = vadd.f32 %v1333_v42, %v3248_v56  ;;  %v1335_v63 = vpop.f32.mrb[9].mxu1  ;;  %v1406_v0 = vpop.f32.mrb[17].mxu0  ;;  %v2717_v29 = vadd.f32 %v1404_v43, %v3253_v5 }
 0x66d   :  { %v2702_v2 = vadd.f32 %v1335_v63, %v3250_v62  ;;  %v2718_v10 = vadd.f32 %v1406_v0, %v3257_v18 }
 0x66e   :  { %v1413_v6 = vmul.f32 0.5, %v2701_v46 }
 0x66f   :  { %v1417_v9 = vmul.f32 0.5, %v2702_v2  ;;  %v1422_v13 = vmul.f32 0.5, %v2718_v10 }
 0x670   :  { %2810 = vtanh.f32 %v1413_v6 }
 0x671   :  { %2812 = vtanh.f32 %v1417_v9 }
 0x672   :  { %2814 = vtanh.f32 %v2717_v29 }
 0x673   :  { %2816 = vtanh.f32 %v1422_v13 }
 0x67a   :  { %v2811_v14 = vpop.eup %2810 }
 0x67b   :  { %v2813_v17 = vpop.eup %2812  ;;  %v1415_v23 = vmul.f32 0.5, %v2811_v14 }
 0x67c   :  { %v1419_v24 = vmul.f32 0.5, %v2813_v17  ;;  %v2815_v26 = vpop.eup %2814 }
 0x67d   :  { %v1416_v25 = vadd.f32 0.5, %v1415_v23  ;;  %v2817_v52 = vpop.eup %2816 }
 0x67e   :  { %v1420_v32 = vadd.f32 0.5, %v1419_v24  ;;  %v1424_v53 = vmul.f32 0.5, %v2817_v52 }
 0x67f   :  { %v1427_v33 = vmul.f32 %v2815_v26, %v1416_v25 }
 0x680   :  { %v1426_v34 = vmul.f32 %v1420_v32, %v3386_v41  ;;  %v1425_v54 = vadd.f32 0.5, %v1424_v53 }
 0x682   :  { %v3428_v35 = vadd.f32 %v1427_v33, %v1426_v34 }
 0x684   :  { %2818 = vtanh.f32 %v3428_v35 }
 0x68e   :  { %v2819_v55 = vpop.eup %2818 }
 0x68f   :  { %v1430_v57 = vmul.f32 %v2819_v55, %v1425_v54  ;;  %v1926_v55 = vld [vmem:[#allocation6 + $0x18] sm:$0xff] }
 0x691   :  { %1496 = vmatmul.mubr.f32.vlgmr.msra.gmra.mrb[10].mxu1 %v1430_v57  ;;  %1567 = vmatmul.mubr.f32.vlgmr.msra.gmra.mrb[18].mxu0 %v1430_v57 }
 0x692   :  { %2544 = vmatpush1.bf16.msra.mxu1 %v3072_v7  ;;  %2576 = vmatpush1.bf16.msra.mxu0 %v3074_v8 }
 0x693   :  { %2546 = vmatprep.subr.bf16.mxu1 %v3076_v15  ;;  %2578 = vmatprep.subr.bf16.mxu0 %v3078_v16 }
 0x694   :  { %1659 = vmatprep.mubr.f32.mxu1 %v2928_v1  ;;  %1730 = vmatprep.mubr.f32.mxu0 %v2928_v1 }
 0x696   :  { %2548 = vmatpush1.bf16.msra.mxu1 %v3084_v21  ;;  %2580 = vmatpush1.bf16.msra.mxu0 %v3086_v22 }
 0x697   :  { %2550 = vmatprep.subr.bf16.mxu1 %v3092_v30  ;;  %2582 = vmatprep.subr.bf16.mxu0 %v3094_v31 }
 0x69a   :  { %2552 = vmatpush1.bf16.msra.mxu1 %v3100_v36  ;;  %2584 = vmatpush1.bf16.msra.mxu0 %v3102_v37 }
 0x69b   :  { %2554 = vmatprep.subr.bf16.mxu1 %v3110_v44  ;;  %2586 = vmatprep.subr.bf16.mxu0 %v3112_v45 }
 0x69e   :  { %2556 = vmatpush1.bf16.msra.mxu1 %v3118_v50  ;;  %2588 = vmatpush1.bf16.msra.mxu0 %v3120_v51 }
 0x69f   :  { %2558 = vmatprep.subr.bf16.mxu1 %v3130_v58  ;;  %2590 = vmatprep.subr.bf16.mxu0 %v3132_v60 }
 0x6a2   :  { %2560 = vmatpush1.bf16.msra.mxu1 %v3138_v3  ;;  %2592 = vmatpush1.bf16.msra.mxu0 %v3140_v4 }
 0x6a3   :  { %2562 = vmatprep.subr.bf16.mxu1 %v3146_v11  ;;  %2594 = vmatprep.subr.bf16.mxu0 %v3148_v12 }
 0x6a6   :  { %2564 = vmatpush1.bf16.msra.mxu1 %v3154_v19  ;;  %2596 = vmatpush1.bf16.msra.mxu0 %v3156_v20 }
 0x6a7   :  { %2566 = vmatprep.subr.bf16.mxu1 %v3162_v27  ;;  %2598 = vmatprep.subr.bf16.mxu0 %v3164_v28 }
 0x6aa   :  { %2568 = vmatpush1.bf16.msra.mxu1 %v3172_v38  ;;  %2600 = vmatpush1.bf16.msra.mxu0 %v3174_v40 }
 0x6ab   :  { %2570 = vmatprep.subr.bf16.mxu1 %v3180_v39  ;;  %2602 = vmatprep.subr.bf16.mxu0 %v3182_v47 }
 0x6ae   :  { %2572 = vmatpush1.bf16.msra.mxu1 %v3190_v48  ;;  %2604 = vmatpush1.bf16.msra.mxu0 %v3192_v49 }
 0x6af   :  { %2606 = vmatprep.subr.bf16.mxu1 %v3066_v59  ;;  %2638 = vmatprep.subr.bf16.mxu0 %v3068_v61 }
 0x764   :  { %v1497_v41 = vpop.f32.mrb[10].mxu1  ;;  %v1568_v42 = vpop.f32.mrb[18].mxu0 }
 0x765   :  { %v2703_v43 = vadd.f32 %v1497_v41, %v3248_v56  ;;  %v1499_v46 = vpop.f32.mrb[11].mxu1  ;;  %v1570_v63 = vpop.f32.mrb[19].mxu0  ;;  %v2719_v9 = vadd.f32 %v1568_v42, %v3253_v5  ;;  %v1927_v41 = vld [vmem:[#allocation6 + $0x20] sm:$0xff]  ;;  %v1928_v42 = vld [vmem:[#allocation6 + $0x28] sm:$0xff] }
 0x766   :  { %v2704_v0 = vadd.f32 %v1499_v46, %v3250_v62  ;;  %v2720_v29 = vadd.f32 %v1570_v63, %v3257_v18  ;;  %v1929_v46 = vld [vmem:[#allocation6 + $0x30] sm:$0xff]  ;;  %v1930_v63 = vld [vmem:[#allocation6 + $0x38] sm:$0xff] }
 0x767   :  { %v1577_v2 = vmul.f32 0.5, %v2703_v43  ;;  %v2676_v43 = vpack.c.bf16 %v1928_v42, %v1927_v41 }
 0x768   :  { %v1581_v6 = vmul.f32 0.5, %v2704_v0  ;;  %v1586_v59 = vmul.f32 0.5, %v2720_v29  ;;  %v2679_v0 = vpack.c.bf16 %v1930_v63, %v1929_v46  ;;  %v1933_v29 = vld [vmem:[#allocation6 + $0x50] sm:$0xff] }
 0x769   :  { %2820 = vtanh.f32 %v1577_v2  ;;  %v1931_v2 = vld [vmem:[#allocation6 + $0x40] sm:$0xff] }
 0x76a   :  { %2822 = vtanh.f32 %v1581_v6  ;;  %v1932_v6 = vld [vmem:[#allocation6 + $0x48] sm:$0xff] }
 0x76b   :  { %2824 = vtanh.f32 %v2719_v9  ;;  %v2682_v9 = vpack.c.bf16 %v1932_v6, %v1931_v2 }
 0x76c   :  { %2826 = vtanh.f32 %v1586_v59  ;;  %v1934_v59 = vld [vmem:[#allocation6 + $0x58] sm:$0xff] }
 0x773   :  { %v2821_v10 = vpop.eup %2820 }
 0x774   :  { %v2823_v61 = vpop.eup %2822  ;;  %v1579_v13 = vmul.f32 0.5, %v2821_v10  ;;  %v2685_v10 = vpack.c.bf16 %v1934_v59, %v1933_v29 }
 0x775   :  { %v1583_v14 = vmul.f32 0.5, %v2823_v61  ;;  %v2825_v23 = vpop.eup %2824  ;;  %v1935_v61 = vld [vmem:[#allocation6 + $0x60] sm:$0xff] }
 0x776   :  { %v1580_v17 = vadd.f32 0.5, %v1579_v13  ;;  %v2827_v33 = vpop.eup %2826  ;;  %v1936_v13 = vld [vmem:[#allocation6 + $0x68] sm:$0xff] }
 0x777   :  { %v1584_v24 = vadd.f32 0.5, %v1583_v14  ;;  %v1588_v34 = vmul.f32 0.5, %v2827_v33  ;;  %v2688_v14 = vpack.c.bf16 %v1936_v13, %v1935_v61 }
 0x778   :  { %v1591_v25 = vmul.f32 %v2825_v23, %v1580_v17  ;;  %v1937_v17 = vld [vmem:[#allocation6 + $0x70] sm:$0xff]  ;;  %v1938_v23 = vld [vmem:[#allocation6 + $0x78] sm:$0xff] }
 0x779   :  { %v1590_v26 = vmul.f32 %v1584_v24, %v3428_v35  ;;  %v1589_v52 = vadd.f32 0.5, %v1588_v34  ;;  %v1925_v35 = vld [vmem:[#allocation6 + $0x10] sm:$0xff]  ;;  %v2691_v24 = vpack.c.bf16 %v1938_v23, %v1937_v17 }
 0x77a   :  { %v2673_v57 = vpack.c.bf16 %v1926_v55, %v1925_v35 }
 0x77b   :  { %v3470_v32 = vadd.f32 %v1591_v25, %v1590_v26 }
 0x77d   :  { %2828 = vtanh.f32 %v3470_v32 }
 0x787   :  { %v2829_v53 = vpop.eup %2828 }
 0x788   :  { %v1594_v54 = vmul.f32 %v2829_v53, %v1589_v52 }
 0x78a   :  { %1660 = vmatmul.mubr.f32.vlgmr.msra.gmra.mrb[12].mxu1 %v1594_v54  ;;  %1731 = vmatmul.mubr.f32.vlgmr.msra.gmra.mrb[20].mxu0 %v1594_v54 }
 0x78b   :  { %2608 = vmatpush1.bf16.msra.mxu1 %v3072_v7  ;;  %2640 = vmatpush1.bf16.msra.mxu0 %v3074_v8 }
 0x78c   :  { %2610 = vmatprep.subr.bf16.mxu1 %v3076_v15  ;;  %2642 = vmatprep.subr.bf16.mxu0 %v3078_v16 }
 0x78d   :  { %1823 = vmatprep.mubr.f32.mxu1 %v2928_v1  ;;  %1894 = vmatprep.mubr.f32.mxu0 %v2928_v1 }
 0x78f   :  { %2612 = vmatpush1.bf16.msra.mxu1 %v3084_v21  ;;  %2644 = vmatpush1.bf16.msra.mxu0 %v3086_v22 }
 0x790   :  { %2614 = vmatprep.subr.bf16.mxu1 %v3092_v30  ;;  %2646 = vmatprep.subr.bf16.mxu0 %v3094_v31 }
 0x793   :  { %2616 = vmatpush1.bf16.msra.mxu1 %v3100_v36  ;;  %2648 = vmatpush1.bf16.msra.mxu0 %v3102_v37 }
 0x794   :  { %2618 = vmatprep.subr.bf16.mxu1 %v3110_v44  ;;  %2650 = vmatprep.subr.bf16.mxu0 %v3112_v45 }
 0x797   :  { %2620 = vmatpush1.bf16.msra.mxu1 %v3118_v50  ;;  %2652 = vmatpush1.bf16.msra.mxu0 %v3120_v51 }
 0x798   :  { %2622 = vmatprep.subr.bf16.mxu1 %v3130_v58  ;;  %2654 = vmatprep.subr.bf16.mxu0 %v3132_v60 }
 0x79b   :  { %2624 = vmatpush1.bf16.msra.mxu1 %v3138_v3  ;;  %2656 = vmatpush1.bf16.msra.mxu0 %v3140_v4 }
 0x79c   :  { %2626 = vmatprep.subr.bf16.mxu1 %v3146_v11  ;;  %2658 = vmatprep.subr.bf16.mxu0 %v3148_v12 }
 0x79f   :  { %2628 = vmatpush1.bf16.msra.mxu1 %v3154_v19  ;;  %2660 = vmatpush1.bf16.msra.mxu0 %v3156_v20 }
 0x7a0   :  { %2630 = vmatprep.subr.bf16.mxu1 %v3162_v27  ;;  %2662 = vmatprep.subr.bf16.mxu0 %v3164_v28 }
 0x7a3   :  { %2632 = vmatpush1.bf16.msra.mxu1 %v3172_v38  ;;  %2664 = vmatpush1.bf16.msra.mxu0 %v3174_v40 }
 0x7a4   :  { %2634 = vmatprep.subr.bf16.mxu1 %v3180_v39  ;;  %2666 = vmatprep.subr.bf16.mxu0 %v3182_v47  ;;  %v1923_v39 = vld [vmem:[#allocation6] sm:$0xff]  ;;  %v1924_v47 = vld [vmem:[#allocation6 + $0x8] sm:$0xff] }
 0x7a7   :  { %2636 = vmatpush1.bf16.msra.mxu1 %v3190_v48  ;;  %2668 = vmatpush1.bf16.msra.mxu0 %v3192_v49  ;;  %v2670_v48 = vpack.c.bf16 %v1924_v47, %v1923_v39  ;;  %v2929_v49 = vmov 0.0|0.0  }
 0x7a8   :  { %2669 = vmatprep.subr.bf16.mxu1 %v2929_v49 }
 0x85d   :  { %v1661_v7 = vpop.f32.mrb[12].mxu1  ;;  %v1732_v8 = vpop.f32.mrb[20].mxu0 }
 0x85e   :  { %v2705_v15 = vadd.f32 %v1661_v7, %v3248_v56  ;;  %v1663_v16 = vpop.f32.mrb[13].mxu1  ;;  %v1734_v21 = vpop.f32.mrb[21].mxu0  ;;  %v2721_v36 = vadd.f32 %v1732_v8, %v3253_v5 }
 0x85f   :  { %v2706_v22 = vadd.f32 %v1663_v16, %v3250_v62  ;;  %v2722_v37 = vadd.f32 %v1734_v21, %v3257_v18 }
 0x860   :  { %v1741_v30 = vmul.f32 0.5, %v2705_v15 }
 0x861   :  { %v1745_v31 = vmul.f32 0.5, %v2706_v22  ;;  %v1750_v44 = vmul.f32 0.5, %v2722_v37 }
 0x862   :  { %2830 = vtanh.f32 %v1741_v30 }
 0x863   :  { %2832 = vtanh.f32 %v1745_v31 }
 0x864   :  { %2834 = vtanh.f32 %v2721_v36 }
 0x865   :  { %2836 = vtanh.f32 %v1750_v44 }
 0x86c   :  { %v2831_v45 = vpop.eup %2830 }
 0x86d   :  { %v2833_v50 = vpop.eup %2832  ;;  %v1743_v51 = vmul.f32 0.5, %v2831_v45 }
 0x86e   :  { %v1747_v58 = vmul.f32 0.5, %v2833_v50  ;;  %v2835_v3 = vpop.eup %2834 }
 0x86f   :  { %v1744_v60 = vadd.f32 0.5, %v1743_v51  ;;  %v2837_v20 = vpop.eup %2836 }
 0x870   :  { %v1748_v4 = vadd.f32 0.5, %v1747_v58  ;;  %v1752_v27 = vmul.f32 0.5, %v2837_v20 }
 0x871   :  { %v1755_v11 = vmul.f32 %v2835_v3, %v1744_v60 }
 0x872   :  { %v1754_v12 = vmul.f32 %v1748_v4, %v3470_v32  ;;  %v1753_v28 = vadd.f32 0.5, %v1752_v27 }
 0x874   :  { %v3510_v19 = vadd.f32 %v1755_v11, %v1754_v12 }
 0x876   :  { %2838 = vtanh.f32 %v3510_v19 }
 0x880   :  { %v2839_v38 = vpop.eup %2838 }
 0x881   :  { %v1758_v40 = vmul.f32 %v2839_v38, %v1753_v28 }
 0x883   :  { %1824 = vmatmul.mubr.f32.vlgmr.msra.gmra.mrb[14].mxu1 %v1758_v40  ;;  %1895 = vmatmul.mubr.f32.vlgmr.msra.gmra.mrb[22].mxu0 %v1758_v40 }
 0x884   :  { %2671 = vmatpush3.bf16.msra.mxu1 %v2670_v48  ;;  %2134 = vmatprep.mubr.msk.f32.mxu1 %vm2930_vm10, %v2928_v1 }
 0x885   :  { %2672 = vmatprep.subr.bf16.mxu1 %v2929_v49 }
 0x888   :  { %2674 = vmatpush3.bf16.msra.mxu1 %v2673_v57 }
 0x889   :  { %2675 = vmatprep.subr.bf16.mxu1 %v2929_v49 }
 0x88c   :  { %2677 = vmatpush3.bf16.msra.mxu1 %v2676_v43 }
 0x88d   :  { %2678 = vmatprep.subr.bf16.mxu1 %v2929_v49 }
 0x890   :  { %2680 = vmatpush3.bf16.msra.mxu1 %v2679_v0 }
 0x891   :  { %2681 = vmatprep.subr.bf16.mxu1 %v2929_v49 }
 0x894   :  { %2683 = vmatpush3.bf16.msra.mxu1 %v2682_v9 }
 0x895   :  { %2684 = vmatprep.subr.bf16.mxu1 %v2929_v49 }
 0x898   :  { %2686 = vmatpush3.bf16.msra.mxu1 %v2685_v10 }
 0x899   :  { %2687 = vmatprep.subr.bf16.mxu1 %v2929_v49 }
 0x89c   :  { %2689 = vmatpush3.bf16.msra.mxu1 %v2688_v14 }
 0x89d   :  { %2690 = vmatprep.subr.bf16.mxu1 %v2929_v49 }
 0x8a0   :  { %2692 = vmatpush3.bf16.msra.mxu1 %v2691_v24 }
 0x956   :  { %v1825_v25 = vpop.f32.mrb[14].mxu1  ;;  %v1896_v26 = vpop.f32.mrb[22].mxu0 }
 0x957   :  { %v2707_v32 = vadd.f32 %v1825_v25, %v3248_v56  ;;  %v1827_v33 = vpop.f32.mrb[15].mxu1  ;;  %v1898_v34 = vpop.f32.mrb[23].mxu0  ;;  %v2723_v7 = vadd.f32 %v1896_v26, %v3253_v5 }
 0x958   :  { %v2708_v52 = vadd.f32 %v1827_v33, %v3250_v62  ;;  %v2724_v8 = vadd.f32 %v1898_v34, %v3257_v18  ;;  %v2055_v18 = vld [vmem:[%s3531_s6] ss:$0 sm:$0xff] }
 0x959   :  { %v1905_v53 = vmul.f32 0.5, %v2707_v32 }
 0x95a   :  { %v1909_v54 = vmul.f32 0.5, %v2708_v52  ;;  %v1914_v15 = vmul.f32 0.5, %v2724_v8 }
 0x95b   :  { %2840 = vtanh.f32 %v1905_v53 }
 0x95c   :  { %2842 = vtanh.f32 %v1909_v54 }
 0x95d   :  { %2844 = vtanh.f32 %v2723_v7 }
 0x95e   :  { %2846 = vtanh.f32 %v1914_v15 }
 0x965   :  { %v2841_v16 = vpop.eup %2840 }
 0x966   :  { %v2843_v1 = vpop.eup %2842  ;;  %v1907_v21 = vmul.f32 0.5, %v2841_v16 }
 0x967   :  { %v1911_v22 = vmul.f32 0.5, %v2843_v1  ;;  %v2845_v30 = vpop.eup %2844 }
 0x968   :  { %v1908_v56 = vadd.f32 0.5, %v1907_v21  ;;  %v2847_v44 = vpop.eup %2846 }
 0x969   :  { %v1912_v31 = vadd.f32 0.5, %v1911_v22  ;;  %v1916_v5 = vmul.f32 0.5, %v2847_v44 }
 0x96a   :  { %v1919_v36 = vmul.f32 %v2845_v30, %v1908_v56 }
 0x96b   :  { %v1918_v62 = vmul.f32 %v1912_v31, %v3510_v19  ;;  %v1917_v45 = vadd.f32 0.5, %v1916_v5 }
 0x96d   :  { %v1920_v37 = vadd.f32 %v1919_v36, %v1918_v62 }
 0x96f   :  { %2848 = vtanh.f32 %v1920_v37 }
 0x979   :  { %v2849_v50 = vpop.eup %2848 }
 0x97a   :  { %v1922_v51 = vmul.f32 %v2849_v50, %v1917_v45 }
 0x97c   :  { %2135 = vmatmul.mubr.f32.vlgmr.msra.gmra.mrb[16].mxu1 %v1922_v51 }
 0xa4f   :  { %v2012_v58 = vpop.f32.mrb[16].mxu1 }
 0xa50   :  { %v2013_v60 = vadd.f32 %v2055_v18, %v2012_v58  ;;  %v2136_v3 = vpop.f32.mrb[17].mxu1 }
 0xa52   :  { %2016 = vst [vmem:[%s3532_s7] sm:$0xff] %v2013_v60 }
 0xa53   :  { %2021 = vsyncpa [#allocation3], 1 }
 0xa54   :  { %2022 = vsyncpa [#allocation5], 1 }

</bundles_post_ra>
